<compile_context>
chip_gen: v6e
topology: v6e:2x2x1
jax: 0.10.0
libtpu: 0.0.40
codegen_flags: <defaults>
</compile_context>

<pallas_src>
import functools

import jax
import jax.numpy as jnp
from jax.experimental import pallas as pl
from jax.experimental.pallas import tpu as pltpu

_EPS = 1e-5
_POOL_KS = (5, 9, 13)


def _hardswish(v):
    # PyTorch Hardswish: x * relu6(x + 3) / 6
    return v * jnp.clip(v + 3.0, 0.0, 6.0) * (1.0 / 6.0)


def _spp_kernel(w1_ref, b1_ref, w2_ref, b2_ref, col_ref, row_ref, x_ref,
                o_ref, acc_ref, *, H, W):
    # w1_ref : (CB, C1)      BN-folded cv1 weight chunk
    # b1_ref : (CB, 1)       BN-folded cv1 bias chunk
    # w2_ref : (4, C2, CB)   BN-folded cv2 weight, branch-major, chunk on lanes
    # b2_ref : (C2, 1)       BN-folded cv2 bias
    # col_ref: (1, HW) i32   w-index of every flattened-spatial lane
    # row_ref: (1, HW) i32   h-index of every flattened-spatial lane
    # x_ref  : (1, C1, HW)   one batch element, spatial flattened (lane-dense)
    # o_ref  : (1, C2, HW)   output block (lane-dense store)
    # acc_ref: (C2, HW) f32  cv2 accumulator across channel chunks
    HW = H * W
    cb = pl.program_id(1)

    @pl.when(cb == 0)
    def _():
        acc_ref[...] = jnp.zeros_like(acc_ref)

    # ---- cv1: 1x1 conv (BN folded) + hardswish, on the MXU -------------------
    x = x_ref[0]                                                   # (C1, HW)
    y = jnp.dot(w1_ref[...], x,
                preferred_element_type=jnp.float32,
                precision=jax.lax.Precision.HIGHEST)               # (CB, HW)
    y = _hardswish(y + b1_ref[...])

    # ---- max pools 5/9/13 (stride 1, same padding) ----------------------------
    # 5x5 pool is separable; masks (computed once) emulate the -inf padding so
    # circular rolls never leak across row / image boundaries.
    NEG = jnp.float32(-1e30)
    col = col_ref[...]
    row = row_ref[...]
    col_taps = [((-d) % HW, jnp.logical_and(col + d >= 0, col + d < W))
                for d in (-2, -1, 1, 2)]
    row_taps = [((-d * W) % HW, jnp.logical_and(row + d >= 0, row + d < H))
                for d in (-2, -1, 1, 2)]

    def pool5(z):
        zw = z
        for s, m in col_taps:   # along W (lane offsets +-1, +-2)
            zw = jnp.maximum(zw, jnp.where(m, pltpu.roll(z, shift=s, axis=1), NEG))
        zh = zw
        for s, m in row_taps:   # along H (lane offsets +-W, +-2W)
            zh = jnp.maximum(zh, jnp.where(m, pltpu.roll(zw, shift=s, axis=1), NEG))
        return zh

    p5 = pool5(y)               # MaxPool2d(5)
    p9 = pool5(p5)              # MaxPool2d(9)  == pool5(pool5)
    p13 = pool5(p9)             # MaxPool2d(13) == pool5(pool5(pool5))

    # ---- cv2: 1x1 conv over the concatenated pyramid, accumulated over chunks --
    total = None
    for i, branch in enumerate((y, p5, p9, p13)):
        c = jnp.dot(w2_ref[i], branch,
                    preferred_element_type=jnp.float32,
                    precision=jax.lax.Precision.HIGHEST)           # (C2, HW)
        total = c if total is None else total + c
    acc_ref[...] += total

    @pl.when(cb == pl.num_programs(1) - 1)
    def _():
        o_ref[0] = _hardswish(acc_ref[...] + b2_ref[...]).astype(o_ref.dtype)


def _pick_chunk(c):
    """cv1-output-channel chunk per grid step. The chunk is the lane dim of the
    w2 block, so when it does not cover the full channel dim it must be a
    multiple of 128."""
    if c <= 256:
        return c
    for cand in (256, 128):
        if c % cand == 0:
            return cand
    return c


def spp(x, params):
    """SPP forward. x: (N, C1, H, W) f32. params: conv weights + BN stats (eval)."""
    N, C1, H, W = x.shape
    HW = H * W

    # ---- fold BatchNorm (eval mode) into the 1x1 convolutions ------------------
    w1 = params["w1"][:, :, 0, 0].astype(jnp.float32)              # (c_, C1)
    s1 = params["bn1_gamma"] / jnp.sqrt(params["bn1_var"] + _EPS)
    w1_eff = w1 * s1[:, None]
    b1_eff = (params["bn1_beta"] - params["bn1_mean"] * s1)[:, None]

    w2 = params["w2"][:, :, 0, 0].astype(jnp.float32)              # (C2, 4*c_)
    s2 = params["bn2_gamma"] / jnp.sqrt(params["bn2_var"] + _EPS)
    w2_eff = w2 * s2[:, None]
    b2_eff = (params["bn2_beta"] - params["bn2_mean"] * s2)[:, None]

    c_ = w1_eff.shape[0]
    C2 = w2_eff.shape[0]
    # (C2, 4*c_) -> (4, C2, c_): branch-major so each branch slice is a plain matmul.
    w2_r = jnp.transpose(w2_eff.reshape(C2, 4, c_), (1, 0, 2))

    CB = _pick_chunk(c_)
    n_cb = c_ // CB

    # Per-lane (flattened spatial) column / row indices for the pooling edge masks.
    col_idx = jnp.tile(jnp.arange(W, dtype=jnp.int32), H).reshape(1, HW)
    row_idx = jnp.repeat(jnp.arange(H, dtype=jnp.int32), W).reshape(1, HW)

    x_flat = x.reshape(N, C1, HW)

    kernel = functools.partial(_spp_kernel, H=H, W=W)

    flops = N * HW * (2 * c_ * (C1 + 4 * C2) + 30 * c_)
    bytes_accessed = 4 * (N * HW * (C1 + C2) + c_ * C1 + 4 * c_ * C2 + c_ + C2 + 2 * HW)

    # VMEM budget: double-buffered blocks + accumulator + pooled intermediates.
    blk_bytes = 4 * (C1 * HW + C2 * HW + CB * C1 + CB + 4 * C2 * CB + C2 + 2 * HW)
    work_bytes = 4 * (C2 * HW + 8 * CB * HW)
    vmem_limit = int(min(112 * 1024 * 1024,
                         max(32 * 1024 * 1024, 2 * blk_bytes + work_bytes)))

    out = pl.pallas_call(
        kernel,
        out_shape=jax.ShapeDtypeStruct((N, C2, HW), jnp.float32),
        grid=(N, n_cb),
        in_specs=[
            pl.BlockSpec((CB, C1), lambda n, cb: (cb, 0)),         # cv1 weight chunk
            pl.BlockSpec((CB, 1), lambda n, cb: (cb, 0)),          # cv1 bias chunk
            pl.BlockSpec((4, C2, CB), lambda n, cb: (0, 0, cb)),   # cv2 weight chunk
            pl.BlockSpec((C2, 1), lambda n, cb: (0, 0)),           # cv2 bias
            pl.BlockSpec((1, HW), lambda n, cb: (0, 0)),           # column indices
            pl.BlockSpec((1, HW), lambda n, cb: (0, 0)),           # row indices
            pl.BlockSpec((1, C1, HW), lambda n, cb: (n, 0, 0)),    # x (one batch)
        ],
        out_specs=pl.BlockSpec((1, C2, HW), lambda n, cb: (n, 0, 0)),
        scratch_shapes=[pltpu.VMEM((C2, HW), jnp.float32)],
        compiler_params=pltpu.CompilerParams(
            dimension_semantics=("parallel", "arbitrary"),
            vmem_limit_bytes=vmem_limit),
        cost_estimate=pl.CostEstimate(flops=int(flops), transcendentals=0,
                                      bytes_accessed=int(bytes_accessed)),
    )(w1_eff, b1_eff, w2_r, b2_eff, col_idx, row_idx, x_flat)

    return out.reshape(N, C2, H, W)


# ----------------------------- pure-JAX reference ------------------------------
def _conv_bn_act_ref(x, w, gamma, beta, mean, var):
    y = jax.lax.conv_general_dilated(
        x, w, window_strides=(1, 1), padding="VALID",
        dimension_numbers=("NCHW", "OIHW", "NCHW"),
        precision=jax.lax.Precision.HIGHEST)
    s = gamma / jnp.sqrt(var + _EPS)
    y = y * s[None, :, None, None] + (beta - mean * s)[None, :, None, None]
    return _hardswish(y)


def _maxpool_same_ref(x, k):
    p = k // 2
    return jax.lax.reduce_window(
        x, -jnp.inf, jax.lax.max,
        window_dimensions=(1, 1, k, k), window_strides=(1, 1, 1, 1),
        padding=((0, 0), (0, 0), (p, p), (p, p)))


def _spp_reference(x, params):
    y = _conv_bn_act_ref(x, params["w1"], params["bn1_gamma"], params["bn1_beta"],
                         params["bn1_mean"], params["bn1_var"])
    feats = [y] + [_maxpool_same_ref(y, k) for k in _POOL_KS]
    return _conv_bn_act_ref(jnp.concatenate(feats, axis=1), params["w2"],
                            params["bn2_gamma"], params["bn2_beta"],
                            params["bn2_mean"], params["bn2_var"])


if __name__ == "__main__":
    key = jax.random.PRNGKey(0)
    ks = jax.random.split(key, 11)

    N, C1, H, W = 2, 4, 16, 16     # H*W = 256 -> lane-dense flattened spatial axis
    C2 = 8
    c_ = C1 // 2

    x = jax.random.normal(ks[0], (N, C1, H, W), dtype=jnp.float32)
    params = {
        "w1": 0.4 * jax.random.normal(ks[1], (c_, C1, 1, 1), dtype=jnp.float32),
        "bn1_gamma": 1.0 + 0.1 * jax.random.normal(ks[2], (c_,), dtype=jnp.float32),
        "bn1_beta": 0.1 * jax.random.normal(ks[3], (c_,), dtype=jnp.float32),
        "bn1_mean": 0.1 * jax.random.normal(ks[4], (c_,), dtype=jnp.float32),
        "bn1_var": 0.5 + jax.random.uniform(ks[5], (c_,), dtype=jnp.float32),
        "w2": 0.3 * jax.random.normal(ks[6], (C2, 4 * c_, 1, 1), dtype=jnp.float32),
        "bn2_gamma": 1.0 + 0.1 * jax.random.normal(ks[7], (C2,), dtype=jnp.float32),
        "bn2_beta": 0.1 * jax.random.normal(ks[8], (C2,), dtype=jnp.float32),
        "bn2_mean": 0.1 * jax.random.normal(ks[9], (C2,), dtype=jnp.float32),
        "bn2_var": 0.5 + jax.random.uniform(ks[10], (C2,), dtype=jnp.float32),
    }

    out = spp(x, params)
    out = jax.block_until_ready(out)

    ref = _spp_reference(x, params)
    assert out.shape == (N, C2, H, W)
    assert jnp.allclose(out, ref, atol=2e-3, rtol=2e-3), \
        float(jnp.max(jnp.abs(out - ref)))

    print("KERNEL_OK")
</pallas_src>

<mosaic_0001>
module attributes {stable_mosaic.version = 11 : i64} {
  func.func @_spp_kernel(%arg0: i32, %arg1: i32, %arg2: memref<2x4xf32, #tpu.memory_space<vmem>>, %arg3: memref<2x1xf32, #tpu.memory_space<vmem>>, %arg4: memref<4x8x2xf32, #tpu.memory_space<vmem>>, %arg5: memref<8x1xf32, #tpu.memory_space<vmem>>, %arg6: memref<1x256xi32, #tpu.memory_space<vmem>>, %arg7: memref<1x256xi32, #tpu.memory_space<vmem>>, %arg8: memref<1x4x256xf32, #tpu.memory_space<vmem>>, %arg9: memref<1x8x256xf32, #tpu.memory_space<vmem>>, %arg10: memref<8x256xf32, #tpu.memory_space<vmem>>) attributes {dimension_semantics = [#tpu.dimension_semantics<parallel>, #tpu.dimension_semantics<arbitrary>], iteration_bounds = array<i64: 2, 1>, scalar_prefetch = 0 : i64, scratch_operands = 1 : i64, tpu.core_type = #tpu.core_type<tc>, window_params = [{transform_indices = @transform_0, window_bounds = array<i64: 2, 4>}, {transform_indices = @transform_1, window_bounds = array<i64: 2, 1>}, {transform_indices = @transform_2, window_bounds = array<i64: 4, 8, 2>}, {pipeline_mode = #tpu.pipeline_mode<synchronous>, transform_indices = @transform_3, window_bounds = array<i64: 8, 1>}, {pipeline_mode = #tpu.pipeline_mode<synchronous>, transform_indices = @transform_4, window_bounds = array<i64: 1, 256>}, {pipeline_mode = #tpu.pipeline_mode<synchronous>, transform_indices = @transform_5, window_bounds = array<i64: 1, 256>}, {transform_indices = @transform_6, window_bounds = array<i64: 1, 4, 256>}, {transform_indices = @transform_7, window_bounds = array<i64: 1, 8, 256>}]} {
    %c0_i32 = arith.constant 0 : i32
    %0 = arith.cmpi eq, %arg1, %c0_i32 : i32
    %1 = arith.extui %0 : i1 to i32
    %c0_i32_0 = arith.constant 0 : i32
    %2 = arith.cmpi ne, %1, %c0_i32_0 : i32
    scf.if %2 {
      %cst_104 = arith.constant 0.000000e+00 : f32
      %258 = vector.broadcast %cst_104 : f32 to vector<8x256xf32>
      %c0_105 = arith.constant 0 : index
      %c0_106 = arith.constant 0 : index
      %259 = vector.load %arg10[%c0_105, %c0_106] : memref<8x256xf32, #tpu.memory_space<vmem>>, vector<8x256xf32>
      tpu.vector_store %arg10[%c0_105, %c0_106], %258 {strides = array<i32>} : memref<8x256xf32, #tpu.memory_space<vmem>>, vector<8x256xf32>,
    } else {
    }
    %c0 = arith.constant 0 : index
    %c0_1 = arith.constant 0 : index
    %c0_2 = arith.constant 0 : index
    %3 = vector.load %arg8[%c0, %c0_1, %c0_2] : memref<1x4x256xf32, #tpu.memory_space<vmem>>, vector<1x4x256xf32>
    %4 = vector.shape_cast %3 : vector<1x4x256xf32> to vector<4x256xf32>
    %c0_3 = arith.constant 0 : index
    %c0_4 = arith.constant 0 : index
    %5 = vector.load %arg2[%c0_3, %c0_4] : memref<2x4xf32, #tpu.memory_space<vmem>>, vector<2x4xf32>
    %cst = arith.constant dense<0.000000e+00> : vector<2x256xf32>
    %6 = tpu.matmul %5, %4, %cst {dimension_numbers = #tpu.dot_dimension_numbers<[1], [0], [0], [1], [0, 0, 1, 1], [], []>, precision = #tpu.contract_precision<fp32>} : vector<2x4xf32>, vector<4x256xf32>, vector<2x256xf32> -> vector<2x256xf32>
    %c0_5 = arith.constant 0 : index
    %c0_6 = arith.constant 0 : index
    %7 = vector.load %arg3[%c0_5, %c0_6] : memref<2x1xf32, #tpu.memory_space<vmem>>, vector<2x1xf32>
    %8 = vector.broadcast %7 : vector<2x1xf32> to vector<2x256xf32>
    %9 = arith.addf %6, %8 : vector<2x256xf32>
    %cst_7 = arith.constant 3.000000e+00 : f32
    %10 = vector.broadcast %cst_7 : f32 to vector<2x256xf32>
    %11 = arith.addf %9, %10 : vector<2x256xf32>
    %cst_8 = arith.constant 0.000000e+00 : f32
    %cst_9 = arith.constant 6.000000e+00 : f32
    %12 = vector.broadcast %cst_8 : f32 to vector<2x256xf32>
    %13 = arith.maximumf %12, %11 : vector<2x256xf32>
    %14 = vector.broadcast %cst_9 : f32 to vector<2x256xf32>
    %15 = arith.minimumf %14, %13 : vector<2x256xf32>
    %16 = arith.mulf %9, %15 : vector<2x256xf32>
    %cst_10 = arith.constant 0.166666672 : f32
    %17 = vector.broadcast %cst_10 : f32 to vector<2x256xf32>
    %18 = arith.mulf %16, %17 : vector<2x256xf32>
    %c0_11 = arith.constant 0 : index
    %c0_12 = arith.constant 0 : index
    %19 = vector.load %arg6[%c0_11, %c0_12] : memref<1x256xi32, #tpu.memory_space<vmem>>, vector<1x256xi32>
    %c0_13 = arith.constant 0 : index
    %c0_14 = arith.constant 0 : index
    %20 = vector.load %arg7[%c0_13, %c0_14] : memref<1x256xi32, #tpu.memory_space<vmem>>, vector<1x256xi32>
    %c-2_i32 = arith.constant -2 : i32
    %21 = vector.broadcast %c-2_i32 : i32 to vector<1x256xi32>
    %22 = arith.addi %19, %21 : vector<1x256xi32>
    %c0_i32_15 = arith.constant 0 : i32
    %23 = vector.broadcast %c0_i32_15 : i32 to vector<1x256xi32>
    %24 = arith.cmpi sge, %22, %23 : vector<1x256xi32>
    %c-2_i32_16 = arith.constant -2 : i32
    %25 = vector.broadcast %c-2_i32_16 : i32 to vector<1x256xi32>
    %26 = arith.addi %19, %25 : vector<1x256xi32>
    %c16_i32 = arith.constant 16 : i32
    %27 = vector.broadcast %c16_i32 : i32 to vector<1x256xi32>
    %28 = arith.cmpi slt, %26, %27 : vector<1x256xi32>
    %29 = arith.andi %24, %28 : vector<1x256xi1>
    %c-1_i32 = arith.constant -1 : i32
    %30 = vector.broadcast %c-1_i32 : i32 to vector<1x256xi32>
    %31 = arith.addi %19, %30 : vector<1x256xi32>
    %c0_i32_17 = arith.constant 0 : i32
    %32 = vector.broadcast %c0_i32_17 : i32 to vector<1x256xi32>
    %33 = arith.cmpi sge, %31, %32 : vector<1x256xi32>
    %c-1_i32_18 = arith.constant -1 : i32
    %34 = vector.broadcast %c-1_i32_18 : i32 to vector<1x256xi32>
    %35 = arith.addi %19, %34 : vector<1x256xi32>
    %c16_i32_19 = arith.constant 16 : i32
    %36 = vector.broadcast %c16_i32_19 : i32 to vector<1x256xi32>
    %37 = arith.cmpi slt, %35, %36 : vector<1x256xi32>
    %38 = arith.andi %33, %37 : vector<1x256xi1>
    %c1_i32 = arith.constant 1 : i32
    %39 = vector.broadcast %c1_i32 : i32 to vector<1x256xi32>
    %40 = arith.addi %19, %39 : vector<1x256xi32>
    %c0_i32_20 = arith.constant 0 : i32
    %41 = vector.broadcast %c0_i32_20 : i32 to vector<1x256xi32>
    %42 = arith.cmpi sge, %40, %41 : vector<1x256xi32>
    %c1_i32_21 = arith.constant 1 : i32
    %43 = vector.broadcast %c1_i32_21 : i32 to vector<1x256xi32>
    %44 = arith.addi %19, %43 : vector<1x256xi32>
    %c16_i32_22 = arith.constant 16 : i32
    %45 = vector.broadcast %c16_i32_22 : i32 to vector<1x256xi32>
    %46 = arith.cmpi slt, %44, %45 : vector<1x256xi32>
    %47 = arith.andi %42, %46 : vector<1x256xi1>
    %c2_i32 = arith.constant 2 : i32
    %48 = vector.broadcast %c2_i32 : i32 to vector<1x256xi32>
    %49 = arith.addi %19, %48 : vector<1x256xi32>
    %c0_i32_23 = arith.constant 0 : i32
    %50 = vector.broadcast %c0_i32_23 : i32 to vector<1x256xi32>
    %51 = arith.cmpi sge, %49, %50 : vector<1x256xi32>
    %c2_i32_24 = arith.constant 2 : i32
    %52 = vector.broadcast %c2_i32_24 : i32 to vector<1x256xi32>
    %53 = arith.addi %19, %52 : vector<1x256xi32>
    %c16_i32_25 = arith.constant 16 : i32
    %54 = vector.broadcast %c16_i32_25 : i32 to vector<1x256xi32>
    %55 = arith.cmpi slt, %53, %54 : vector<1x256xi32>
    %56 = arith.andi %51, %55 : vector<1x256xi1>
    %c-2_i32_26 = arith.constant -2 : i32
    %57 = vector.broadcast %c-2_i32_26 : i32 to vector<1x256xi32>
    %58 = arith.addi %20, %57 : vector<1x256xi32>
    %c0_i32_27 = arith.constant 0 : i32
    %59 = vector.broadcast %c0_i32_27 : i32 to vector<1x256xi32>
    %60 = arith.cmpi sge, %58, %59 : vector<1x256xi32>
    %c-2_i32_28 = arith.constant -2 : i32
    %61 = vector.broadcast %c-2_i32_28 : i32 to vector<1x256xi32>
    %62 = arith.addi %20, %61 : vector<1x256xi32>
    %c16_i32_29 = arith.constant 16 : i32
    %63 = vector.broadcast %c16_i32_29 : i32 to vector<1x256xi32>
    %64 = arith.cmpi slt, %62, %63 : vector<1x256xi32>
    %65 = arith.andi %60, %64 : vector<1x256xi1>
    %c-1_i32_30 = arith.constant -1 : i32
    %66 = vector.broadcast %c-1_i32_30 : i32 to vector<1x256xi32>
    %67 = arith.addi %20, %66 : vector<1x256xi32>
    %c0_i32_31 = arith.constant 0 : i32
    %68 = vector.broadcast %c0_i32_31 : i32 to vector<1x256xi32>
    %69 = arith.cmpi sge, %67, %68 : vector<1x256xi32>
    %c-1_i32_32 = arith.constant -1 : i32
    %70 = vector.broadcast %c-1_i32_32 : i32 to vector<1x256xi32>
    %71 = arith.addi %20, %70 : vector<1x256xi32>
    %c16_i32_33 = arith.constant 16 : i32
    %72 = vector.broadcast %c16_i32_33 : i32 to vector<1x256xi32>
    %73 = arith.cmpi slt, %71, %72 : vector<1x256xi32>
    %74 = arith.andi %69, %73 : vector<1x256xi1>
    %c1_i32_34 = arith.constant 1 : i32
    %75 = vector.broadcast %c1_i32_34 : i32 to vector<1x256xi32>
    %76 = arith.addi %20, %75 : vector<1x256xi32>
    %c0_i32_35 = arith.constant 0 : i32
    %77 = vector.broadcast %c0_i32_35 : i32 to vector<1x256xi32>
    %78 = arith.cmpi sge, %76, %77 : vector<1x256xi32>
    %c1_i32_36 = arith.constant 1 : i32
    %79 = vector.broadcast %c1_i32_36 : i32 to vector<1x256xi32>
    %80 = arith.addi %20, %79 : vector<1x256xi32>
    %c16_i32_37 = arith.constant 16 : i32
    %81 = vector.broadcast %c16_i32_37 : i32 to vector<1x256xi32>
    %82 = arith.cmpi slt, %80, %81 : vector<1x256xi32>
    %83 = arith.andi %78, %82 : vector<1x256xi1>
    %c2_i32_38 = arith.constant 2 : i32
    %84 = vector.broadcast %c2_i32_38 : i32 to vector<1x256xi32>
    %85 = arith.addi %20, %84 : vector<1x256xi32>
    %c0_i32_39 = arith.constant 0 : i32
    %86 = vector.broadcast %c0_i32_39 : i32 to vector<1x256xi32>
    %87 = arith.cmpi sge, %85, %86 : vector<1x256xi32>
    %c2_i32_40 = arith.constant 2 : i32
    %88 = vector.broadcast %c2_i32_40 : i32 to vector<1x256xi32>
    %89 = arith.addi %20, %88 : vector<1x256xi32>
    %c16_i32_41 = arith.constant 16 : i32
    %90 = vector.broadcast %c16_i32_41 : i32 to vector<1x256xi32>
    %91 = arith.cmpi slt, %89, %90 : vector<1x256xi32>
    %92 = arith.andi %87, %91 : vector<1x256xi1>
    %c2_i32_42 = arith.constant 2 : i32
    %93 = tpu.dynamic_rotate %18 by %c2_i32_42 dim 1 : vector<2x256xf32>, i32 -> vector<2x256xf32>
    %cst_43 = arith.constant -1.000000e+30 : f32
    %94 = vector.shape_cast %29 : vector<1x256xi1> to vector<1x256xi1>
    %95 = vector.broadcast %94 : vector<1x256xi1> to vector<2x256xi1>
    %96 = vector.broadcast %cst_43 : f32 to vector<2x256xf32>
    %97 = arith.select %95, %93, %96 : vector<2x256xi1>, vector<2x256xf32>
    %98 = arith.maximumf %18, %97 : vector<2x256xf32>
    %c1_i32_44 = arith.constant 1 : i32
    %99 = tpu.dynamic_rotate %18 by %c1_i32_44 dim 1 : vector<2x256xf32>, i32 -> vector<2x256xf32>
    %cst_45 = arith.constant -1.000000e+30 : f32
    %100 = vector.shape_cast %38 : vector<1x256xi1> to vector<1x256xi1>
    %101 = vector.broadcast %100 : vector<1x256xi1> to vector<2x256xi1>
    %102 = vector.broadcast %cst_45 : f32 to vector<2x256xf32>
    %103 = arith.select %101, %99, %102 : vector<2x256xi1>, vector<2x256xf32>
    %104 = arith.maximumf %98, %103 : vector<2x256xf32>
    %c255_i32 = arith.constant 255 : i32
    %105 = tpu.dynamic_rotate %18 by %c255_i32 dim 1 : vector<2x256xf32>, i32 -> vector<2x256xf32>
    %cst_46 = arith.constant -1.000000e+30 : f32
    %106 = vector.shape_cast %47 : vector<1x256xi1> to vector<1x256xi1>
    %107 = vector.broadcast %106 : vector<1x256xi1> to vector<2x256xi1>
    %108 = vector.broadcast %cst_46 : f32 to vector<2x256xf32>
    %109 = arith.select %107, %105, %108 : vector<2x256xi1>, vector<2x256xf32>
    %110 = arith.maximumf %104, %109 : vector<2x256xf32>
    %c254_i32 = arith.constant 254 : i32
    %111 = tpu.dynamic_rotate %18 by %c254_i32 dim 1 : vector<2x256xf32>, i32 -> vector<2x256xf32>
    %cst_47 = arith.constant -1.000000e+30 : f32
    %112 = vector.shape_cast %56 : vector<1x256xi1> to vector<1x256xi1>
    %113 = vector.broadcast %112 : vector<1x256xi1> to vector<2x256xi1>
    %114 = vector.broadcast %cst_47 : f32 to vector<2x256xf32>
    %115 = arith.select %113, %111, %114 : vector<2x256xi1>, vector<2x256xf32>
    %116 = arith.maximumf %110, %115 : vector<2x256xf32>
    %c32_i32 = arith.constant 32 : i32
    %117 = tpu.dynamic_rotate %116 by %c32_i32 dim 1 : vector<2x256xf32>, i32 -> vector<2x256xf32>
    %cst_48 = arith.constant -1.000000e+30 : f32
    %118 = vector.shape_cast %65 : vector<1x256xi1> to vector<1x256xi1>
    %119 = vector.broadcast %118 : vector<1x256xi1> to vector<2x256xi1>
    %120 = vector.broadcast %cst_48 : f32 to vector<2x256xf32>
    %121 = arith.select %119, %117, %120 : vector<2x256xi1>, vector<2x256xf32>
    %122 = arith.maximumf %116, %121 : vector<2x256xf32>
    %c16_i32_49 = arith.constant 16 : i32
    %123 = tpu.dynamic_rotate %116 by %c16_i32_49 dim 1 : vector<2x256xf32>, i32 -> vector<2x256xf32>
    %cst_50 = arith.constant -1.000000e+30 : f32
    %124 = vector.shape_cast %74 : vector<1x256xi1> to vector<1x256xi1>
    %125 = vector.broadcast %124 : vector<1x256xi1> to vector<2x256xi1>
    %126 = vector.broadcast %cst_50 : f32 to vector<2x256xf32>
    %127 = arith.select %125, %123, %126 : vector<2x256xi1>, vector<2x256xf32>
    %128 = arith.maximumf %122, %127 : vector<2x256xf32>
    %c240_i32 = arith.constant 240 : i32
    %129 = tpu.dynamic_rotate %116 by %c240_i32 dim 1 : vector<2x256xf32>, i32 -> vector<2x256xf32>
    %cst_51 = arith.constant -1.000000e+30 : f32
    %130 = vector.shape_cast %83 : vector<1x256xi1> to vector<1x256xi1>
    %131 = vector.broadcast %130 : vector<1x256xi1> to vector<2x256xi1>
    %132 = vector.broadcast %cst_51 : f32 to vector<2x256xf32>
    %133 = arith.select %131, %129, %132 : vector<2x256xi1>, vector<2x256xf32>
    %134 = arith.maximumf %128, %133 : vector<2x256xf32>
    %c224_i32 = arith.constant 224 : i32
    %135 = tpu.dynamic_rotate %116 by %c224_i32 dim 1 : vector<2x256xf32>, i32 -> vector<2x256xf32>
    %cst_52 = arith.constant -1.000000e+30 : f32
    %136 = vector.shape_cast %92 : vector<1x256xi1> to vector<1x256xi1>
    %137 = vector.broadcast %136 : vector<1x256xi1> to vector<2x256xi1>
    %138 = vector.broadcast %cst_52 : f32 to vector<2x256xf32>
    %139 = arith.select %137, %135, %138 : vector<2x256xi1>, vector<2x256xf32>
    %140 = arith.maximumf %134, %139 : vector<2x256xf32>
    %c2_i32_53 = arith.constant 2 : i32
    %141 = tpu.dynamic_rotate %140 by %c2_i32_53 dim 1 : vector<2x256xf32>, i32 -> vector<2x256xf32>
    %cst_54 = arith.constant -1.000000e+30 : f32
    %142 = vector.shape_cast %29 : vector<1x256xi1> to vector<1x256xi1>
    %143 = vector.broadcast %142 : vector<1x256xi1> to vector<2x256xi1>
    %144 = vector.broadcast %cst_54 : f32 to vector<2x256xf32>
    %145 = arith.select %143, %141, %144 : vector<2x256xi1>, vector<2x256xf32>
    %146 = arith.maximumf %140, %145 : vector<2x256xf32>
    %c1_i32_55 = arith.constant 1 : i32
    %147 = tpu.dynamic_rotate %140 by %c1_i32_55 dim 1 : vector<2x256xf32>, i32 -> vector<2x256xf32>
    %cst_56 = arith.constant -1.000000e+30 : f32
    %148 = vector.shape_cast %38 : vector<1x256xi1> to vector<1x256xi1>
    %149 = vector.broadcast %148 : vector<1x256xi1> to vector<2x256xi1>
    %150 = vector.broadcast %cst_56 : f32 to vector<2x256xf32>
    %151 = arith.select %149, %147, %150 : vector<2x256xi1>, vector<2x256xf32>
    %152 = arith.maximumf %146, %151 : vector<2x256xf32>
    %c255_i32_57 = arith.constant 255 : i32
    %153 = tpu.dynamic_rotate %140 by %c255_i32_57 dim 1 : vector<2x256xf32>, i32 -> vector<2x256xf32>
    %cst_58 = arith.constant -1.000000e+30 : f32
    %154 = vector.shape_cast %47 : vector<1x256xi1> to vector<1x256xi1>
    %155 = vector.broadcast %154 : vector<1x256xi1> to vector<2x256xi1>
    %156 = vector.broadcast %cst_58 : f32 to vector<2x256xf32>
    %157 = arith.select %155, %153, %156 : vector<2x256xi1>, vector<2x256xf32>
    %158 = arith.maximumf %152, %157 : vector<2x256xf32>
    %c254_i32_59 = arith.constant 254 : i32
    %159 = tpu.dynamic_rotate %140 by %c254_i32_59 dim 1 : vector<2x256xf32>, i32 -> vector<2x256xf32>
    %cst_60 = arith.constant -1.000000e+30 : f32
    %160 = vector.shape_cast %56 : vector<1x256xi1> to vector<1x256xi1>
    %161 = vector.broadcast %160 : vector<1x256xi1> to vector<2x256xi1>
    %162 = vector.broadcast %cst_60 : f32 to vector<2x256xf32>
    %163 = arith.select %161, %159, %162 : vector<2x256xi1>, vector<2x256xf32>
    %164 = arith.maximumf %158, %163 : vector<2x256xf32>
    %c32_i32_61 = arith.constant 32 : i32
    %165 = tpu.dynamic_rotate %164 by %c32_i32_61 dim 1 : vector<2x256xf32>, i32 -> vector<2x256xf32>
    %cst_62 = arith.constant -1.000000e+30 : f32
    %166 = vector.shape_cast %65 : vector<1x256xi1> to vector<1x256xi1>
    %167 = vector.broadcast %166 : vector<1x256xi1> to vector<2x256xi1>
    %168 = vector.broadcast %cst_62 : f32 to vector<2x256xf32>
    %169 = arith.select %167, %165, %168 : vector<2x256xi1>, vector<2x256xf32>
    %170 = arith.maximumf %164, %169 : vector<2x256xf32>
    %c16_i32_63 = arith.constant 16 : i32
    %171 = tpu.dynamic_rotate %164 by %c16_i32_63 dim 1 : vector<2x256xf32>, i32 -> vector<2x256xf32>
    %cst_64 = arith.constant -1.000000e+30 : f32
    %172 = vector.shape_cast %74 : vector<1x256xi1> to vector<1x256xi1>
    %173 = vector.broadcast %172 : vector<1x256xi1> to vector<2x256xi1>
    %174 = vector.broadcast %cst_64 : f32 to vector<2x256xf32>
    %175 = arith.select %173, %171, %174 : vector<2x256xi1>, vector<2x256xf32>
    %176 = arith.maximumf %170, %175 : vector<2x256xf32>
    %c240_i32_65 = arith.constant 240 : i32
    %177 = tpu.dynamic_rotate %164 by %c240_i32_65 dim 1 : vector<2x256xf32>, i32 -> vector<2x256xf32>
    %cst_66 = arith.constant -1.000000e+30 : f32
    %178 = vector.shape_cast %83 : vector<1x256xi1> to vector<1x256xi1>
    %179 = vector.broadcast %178 : vector<1x256xi1> to vector<2x256xi1>
    %180 = vector.broadcast %cst_66 : f32 to vector<2x256xf32>
    %181 = arith.select %179, %177, %180 : vector<2x256xi1>, vector<2x256xf32>
    %182 = arith.maximumf %176, %181 : vector<2x256xf32>
    %c224_i32_67 = arith.constant 224 : i32
    %183 = tpu.dynamic_rotate %164 by %c224_i32_67 dim 1 : vector<2x256xf32>, i32 -> vector<2x256xf32>
    %cst_68 = arith.constant -1.000000e+30 : f32
    %184 = vector.shape_cast %92 : vector<1x256xi1> to vector<1x256xi1>
    %185 = vector.broadcast %184 : vector<1x256xi1> to vector<2x256xi1>
    %186 = vector.broadcast %cst_68 : f32 to vector<2x256xf32>
    %187 = arith.select %185, %183, %186 : vector<2x256xi1>, vector<2x256xf32>
    %188 = arith.maximumf %182, %187 : vector<2x256xf32>
    %c2_i32_69 = arith.constant 2 : i32
    %189 = tpu.dynamic_rotate %188 by %c2_i32_69 dim 1 : vector<2x256xf32>, i32 -> vector<2x256xf32>
    %cst_70 = arith.constant -1.000000e+30 : f32
    %190 = vector.shape_cast %29 : vector<1x256xi1> to vector<1x256xi1>
    %191 = vector.broadcast %190 : vector<1x256xi1> to vector<2x256xi1>
    %192 = vector.broadcast %cst_70 : f32 to vector<2x256xf32>
    %193 = arith.select %191, %189, %192 : vector<2x256xi1>, vector<2x256xf32>
    %194 = arith.maximumf %188, %193 : vector<2x256xf32>
    %c1_i32_71 = arith.constant 1 : i32
    %195 = tpu.dynamic_rotate %188 by %c1_i32_71 dim 1 : vector<2x256xf32>, i32 -> vector<2x256xf32>
    %cst_72 = arith.constant -1.000000e+30 : f32
    %196 = vector.shape_cast %38 : vector<1x256xi1> to vector<1x256xi1>
    %197 = vector.broadcast %196 : vector<1x256xi1> to vector<2x256xi1>
    %198 = vector.broadcast %cst_72 : f32 to vector<2x256xf32>
    %199 = arith.select %197, %195, %198 : vector<2x256xi1>, vector<2x256xf32>
    %200 = arith.maximumf %194, %199 : vector<2x256xf32>
    %c255_i32_73 = arith.constant 255 : i32
    %201 = tpu.dynamic_rotate %188 by %c255_i32_73 dim 1 : vector<2x256xf32>, i32 -> vector<2x256xf32>
    %cst_74 = arith.constant -1.000000e+30 : f32
    %202 = vector.shape_cast %47 : vector<1x256xi1> to vector<1x256xi1>
    %203 = vector.broadcast %202 : vector<1x256xi1> to vector<2x256xi1>
    %204 = vector.broadcast %cst_74 : f32 to vector<2x256xf32>
    %205 = arith.select %203, %201, %204 : vector<2x256xi1>, vector<2x256xf32>
    %206 = arith.maximumf %200, %205 : vector<2x256xf32>
    %c254_i32_75 = arith.constant 254 : i32
    %207 = tpu.dynamic_rotate %188 by %c254_i32_75 dim 1 : vector<2x256xf32>, i32 -> vector<2x256xf32>
    %cst_76 = arith.constant -1.000000e+30 : f32
    %208 = vector.shape_cast %56 : vector<1x256xi1> to vector<1x256xi1>
    %209 = vector.broadcast %208 : vector<1x256xi1> to vector<2x256xi1>
    %210 = vector.broadcast %cst_76 : f32 to vector<2x256xf32>
    %211 = arith.select %209, %207, %210 : vector<2x256xi1>, vector<2x256xf32>
    %212 = arith.maximumf %206, %211 : vector<2x256xf32>
    %c32_i32_77 = arith.constant 32 : i32
    %213 = tpu.dynamic_rotate %212 by %c32_i32_77 dim 1 : vector<2x256xf32>, i32 -> vector<2x256xf32>
    %cst_78 = arith.constant -1.000000e+30 : f32
    %214 = vector.shape_cast %65 : vector<1x256xi1> to vector<1x256xi1>
    %215 = vector.broadcast %214 : vector<1x256xi1> to vector<2x256xi1>
    %216 = vector.broadcast %cst_78 : f32 to vector<2x256xf32>
    %217 = arith.select %215, %213, %216 : vector<2x256xi1>, vector<2x256xf32>
    %218 = arith.maximumf %212, %217 : vector<2x256xf32>
    %c16_i32_79 = arith.constant 16 : i32
    %219 = tpu.dynamic_rotate %212 by %c16_i32_79 dim 1 : vector<2x256xf32>, i32 -> vector<2x256xf32>
    %cst_80 = arith.constant -1.000000e+30 : f32
    %220 = vector.shape_cast %74 : vector<1x256xi1> to vector<1x256xi1>
    %221 = vector.broadcast %220 : vector<1x256xi1> to vector<2x256xi1>
    %222 = vector.broadcast %cst_80 : f32 to vector<2x256xf32>
    %223 = arith.select %221, %219, %222 : vector<2x256xi1>, vector<2x256xf32>
    %224 = arith.maximumf %218, %223 : vector<2x256xf32>
    %c240_i32_81 = arith.constant 240 : i32
    %225 = tpu.dynamic_rotate %212 by %c240_i32_81 dim 1 : vector<2x256xf32>, i32 -> vector<2x256xf32>
    %cst_82 = arith.constant -1.000000e+30 : f32
    %226 = vector.shape_cast %83 : vector<1x256xi1> to vector<1x256xi1>
    %227 = vector.broadcast %226 : vector<1x256xi1> to vector<2x256xi1>
    %228 = vector.broadcast %cst_82 : f32 to vector<2x256xf32>
    %229 = arith.select %227, %225, %228 : vector<2x256xi1>, vector<2x256xf32>
    %230 = arith.maximumf %224, %229 : vector<2x256xf32>
    %c224_i32_83 = arith.constant 224 : i32
    %231 = tpu.dynamic_rotate %212 by %c224_i32_83 dim 1 : vector<2x256xf32>, i32 -> vector<2x256xf32>
    %cst_84 = arith.constant -1.000000e+30 : f32
    %232 = vector.shape_cast %92 : vector<1x256xi1> to vector<1x256xi1>
    %233 = vector.broadcast %232 : vector<1x256xi1> to vector<2x256xi1>
    %234 = vector.broadcast %cst_84 : f32 to vector<2x256xf32>
    %235 = arith.select %233, %231, %234 : vector<2x256xi1>, vector<2x256xf32>
    %236 = arith.maximumf %230, %235 : vector<2x256xf32>
    %c0_85 = arith.constant 0 : index
    %c0_86 = arith.constant 0 : index
    %c0_87 = arith.constant 0 : index
    %237 = vector.load %arg4[%c0_85, %c0_86, %c0_87] : memref<4x8x2xf32, #tpu.memory_space<vmem>>, vector<1x8x2xf32>
    %238 = vector.shape_cast %237 : vector<1x8x2xf32> to vector<8x2xf32>
    %cst_88 = arith.constant dense<0.000000e+00> : vector<8x256xf32>
    %239 = tpu.matmul %238, %18, %cst_88 {dimension_numbers = #tpu.dot_dimension_numbers<[1], [0], [0], [1], [0, 0, 1, 1], [], []>, precision = #tpu.contract_precision<fp32>} : vector<8x2xf32>, vector<2x256xf32>, vector<8x256xf32> -> vector<8x256xf32>
    %c1 = arith.constant 1 : index
    %c0_89 = arith.constant 0 : index
    %c0_90 = arith.constant 0 : index
    %240 = vector.load %arg4[%c1, %c0_89, %c0_90] : memref<4x8x2xf32, #tpu.memory_space<vmem>>, vector<1x8x2xf32>
    %241 = vector.shape_cast %240 : vector<1x8x2xf32> to vector<8x2xf32>
    %cst_91 = arith.constant dense<0.000000e+00> : vector<8x256xf32>
    %242 = tpu.matmul %241, %140, %cst_91 {dimension_numbers = #tpu.dot_dimension_numbers<[1], [0], [0], [1], [0, 0, 1, 1], [], []>, precision = #tpu.contract_precision<fp32>} : vector<8x2xf32>, vector<2x256xf32>, vector<8x256xf32> -> vector<8x256xf32>
    %243 = arith.addf %239, %242 : vector<8x256xf32>
    %c2 = arith.constant 2 : index
    %c0_92 = arith.constant 0 : index
    %c0_93 = arith.constant 0 : index
    %244 = vector.load %arg4[%c2, %c0_92, %c0_93] : memref<4x8x2xf32, #tpu.memory_space<vmem>>, vector<1x8x2xf32>
    %245 = vector.shape_cast %244 : vector<1x8x2xf32> to vector<8x2xf32>
    %cst_94 = arith.constant dense<0.000000e+00> : vector<8x256xf32>
    %246 = tpu.matmul %245, %188, %cst_94 {dimension_numbers = #tpu.dot_dimension_numbers<[1], [0], [0], [1], [0, 0, 1, 1], [], []>, precision = #tpu.contract_precision<fp32>} : vector<8x2xf32>, vector<2x256xf32>, vector<8x256xf32> -> vector<8x256xf32>
    %247 = arith.addf %243, %246 : vector<8x256xf32>
    %c3 = arith.constant 3 : index
    %c0_95 = arith.constant 0 : index
    %c0_96 = arith.constant 0 : index
    %248 = vector.load %arg4[%c3, %c0_95, %c0_96] : memref<4x8x2xf32, #tpu.memory_space<vmem>>, vector<1x8x2xf32>
    %249 = vector.shape_cast %248 : vector<1x8x2xf32> to vector<8x2xf32>
    %cst_97 = arith.constant dense<0.000000e+00> : vector<8x256xf32>
    %250 = tpu.matmul %249, %236, %cst_97 {dimension_numbers = #tpu.dot_dimension_numbers<[1], [0], [0], [1], [0, 0, 1, 1], [], []>, precision = #tpu.contract_precision<fp32>} : vector<8x2xf32>, vector<2x256xf32>, vector<8x256xf32> -> vector<8x256xf32>
    %251 = arith.addf %247, %250 : vector<8x256xf32>
    %c0_98 = arith.constant 0 : index
    %c0_99 = arith.constant 0 : index
    %252 = vector.load %arg10[%c0_98, %c0_99] : memref<8x256xf32, #tpu.memory_space<vmem>>, vector<8x256xf32>
    %253 = arith.addf %252, %251 : vector<8x256xf32>
    %c0_100 = arith.constant 0 : index
    %c0_101 = arith.constant 0 : index
    %254 = vector.load %arg10[%c0_100, %c0_101] : memref<8x256xf32, #tpu.memory_space<vmem>>, vector<8x256xf32>
    tpu.vector_store %arg10[%c0_100, %c0_101], %253 {strides = array<i32>} : memref<8x256xf32, #tpu.memory_space<vmem>>, vector<8x256xf32>,
    %c0_i32_102 = arith.constant 0 : i32
    %255 = arith.cmpi eq, %arg1, %c0_i32_102 : i32
    %256 = arith.extui %255 : i1 to i32
    %c0_i32_103 = arith.constant 0 : i32
    %257 = arith.cmpi ne, %256, %c0_i32_103 : i32
    scf.if %257 {
      %c0_104 = arith.constant 0 : index
      %c0_105 = arith.constant 0 : index
      %258 = vector.load %arg10[%c0_104, %c0_105] : memref<8x256xf32, #tpu.memory_space<vmem>>, vector<8x256xf32>
      %c0_106 = arith.constant 0 : index
      %c0_107 = arith.constant 0 : index
      %259 = vector.load %arg5[%c0_106, %c0_107] : memref<8x1xf32, #tpu.memory_space<vmem>>, vector<8x1xf32>
      %260 = vector.broadcast %259 : vector<8x1xf32> to vector<8x256xf32>
      %261 = arith.addf %258, %260 : vector<8x256xf32>
      %cst_108 = arith.constant 3.000000e+00 : f32
      %262 = vector.broadcast %cst_108 : f32 to vector<8x256xf32>
      %263 = arith.addf %261, %262 : vector<8x256xf32>
      %cst_109 = arith.constant 0.000000e+00 : f32
      %cst_110 = arith.constant 6.000000e+00 : f32
      %264 = vector.broadcast %cst_109 : f32 to vector<8x256xf32>
      %265 = arith.maximumf %264, %263 : vector<8x256xf32>
      %266 = vector.broadcast %cst_110 : f32 to vector<8x256xf32>
      %267 = arith.minimumf %266, %265 : vector<8x256xf32>
      %268 = arith.mulf %261, %267 : vector<8x256xf32>
      %cst_111 = arith.constant 0.166666672 : f32
      %269 = vector.broadcast %cst_111 : f32 to vector<8x256xf32>
      %270 = arith.mulf %268, %269 : vector<8x256xf32>
      %c0_112 = arith.constant 0 : index
      %c0_113 = arith.constant 0 : index
      %c0_114 = arith.constant 0 : index
      %271 = vector.load %arg9[%c0_112, %c0_113, %c0_114] : memref<1x8x256xf32, #tpu.memory_space<vmem>>, vector<1x8x256xf32>
      %272 = vector.shape_cast %271 : vector<1x8x256xf32> to vector<8x256xf32>
      %273 = vector.shape_cast %270 : vector<8x256xf32> to vector<1x8x256xf32>
      tpu.vector_store %arg9[%c0_112, %c0_113, %c0_114], %273 {strides = array<i32>} : memref<1x8x256xf32, #tpu.memory_space<vmem>>, vector<1x8x256xf32>,
    } else {
    }
    return
  }
  func.func @transform_0(%arg0: i32, %arg1: i32) -> (i32, i32) {
    %c0_i32 = arith.constant 0 : i32
    %c0_i32_0 = arith.constant 0 : i32
    return %arg1, %c0_i32 : i32, i32
  }
  func.func @transform_1(%arg0: i32, %arg1: i32) -> (i32, i32) {
    %c0_i32 = arith.constant 0 : i32
    %c0_i32_0 = arith.constant 0 : i32
    return %arg1, %c0_i32 : i32, i32
  }
  func.func @transform_2(%arg0: i32, %arg1: i32) -> (i32, i32, i32) {
    %c0_i32 = arith.constant 0 : i32
    %c0_i32_0 = arith.constant 0 : i32
    %c0_i32_1 = arith.constant 0 : i32
    return %c0_i32, %c0_i32_0, %arg1 : i32, i32, i32
  }
  func.func @transform_3(%arg0: i32, %arg1: i32) -> (i32, i32) {
    %c0_i32 = arith.constant 0 : i32
    %c0_i32_0 = arith.constant 0 : i32
    %c0_i32_1 = arith.constant 0 : i32
    return %c0_i32, %c0_i32_0 : i32, i32
  }
  func.func @transform_4(%arg0: i32, %arg1: i32) -> (i32, i32) {
    %c0_i32 = arith.constant 0 : i32
    %c0_i32_0 = arith.constant 0 : i32
    %c0_i32_1 = arith.constant 0 : i32
    return %c0_i32, %c0_i32_0 : i32, i32
  }
  func.func @transform_5(%arg0: i32, %arg1: i32) -> (i32, i32) {
    %c0_i32 = arith.constant 0 : i32
    %c0_i32_0 = arith.constant 0 : i32
    %c0_i32_1 = arith.constant 0 : i32
    return %c0_i32, %c0_i32_0 : i32, i32
  }
  func.func @transform_6(%arg0: i32, %arg1: i32) -> (i32, i32, i32) {
    %c0_i32 = arith.constant 0 : i32
    %c0_i32_0 = arith.constant 0 : i32
    %c0_i32_1 = arith.constant 0 : i32
    return %arg0, %c0_i32, %c0_i32_0 : i32, i32, i32
  }
  func.func @transform_7(%arg0: i32, %arg1: i32) -> (i32, i32, i32) {
    %c0_i32 = arith.constant 0 : i32
    %c0_i32_0 = arith.constant 0 : i32
    %c0_i32_1 = arith.constant 0 : i32
    return %arg0, %c0_i32, %c0_i32_0 : i32, i32, i32
  }
}

</mosaic_0001>

<bundles_post_ra>
// kernel: tpu_custom_call.1
= control target key start
LH: loop header
LB: loop body
LE: loop exit
PB: predicated region body
PF: predicated region fallthrough
CT: control target
= control target key end

     0   :  { %12 = vsyncpa [#allocation4], 0  ;;  %s4104_s0 = inlined_call_operand.vmem [shape: f32[2,4], index: 0, kind: input, shape index: {}]   ;;  %s4105_s1 = inlined_call_operand.vmem [shape: f32[2,1], index: 1, kind: input, shape index: {}]   ;;  %s4106_s2 = inlined_call_operand.vmem [shape: f32[4,8,2], index: 2, kind: input, shape index: {}]   ;;  %s4107_s3 = inlined_call_operand.vmem [shape: f32[8,1], index: 3, kind: input, shape index: {}]   ;;  %s4108_s4 = inlined_call_operand.vmem [shape: s32[1,256], index: 4, kind: input, shape index: {}]   ;;  %s4109_s5 = inlined_call_operand.vmem [shape: s32[1,256], index: 5, kind: input, shape index: {}]   ;;  %s4110_s6 = inlined_call_operand.vmem [shape: f32[2,4,256], index: 6, kind: input, shape index: {}]   ;;  %s4111_s7 = inlined_call_operand.hbm [shape: f32[2,8,256], index: 7, kind: output, shape index: {}]  }
   0x1   :  { %14 = vsyncpa [#allocation4 + $0x1], 0  ;;  %s3497_s24 = smov 0   ;;  %s3499_s25 = smov 0  }
   0x2   :  { %s3501_s26 = smov 0   ;;  %s3503_s27 = smov 0  }
   0x3   :  { %s3505_s28 = smov 0   ;;  %s3507_s29 = smov 0  }
   0x4 LB: > { %s3279_s30 = sadd.s32 4294967295, %s3444_s29   ;;  %s3280_s8 = sadd.s32 4294967294, %s3444_s29   ;;  %s3444_s29 = sphi %s3507_s29, %s20_s29   ;;  %s3440_s28 = sphi %s3505_s28, %s4216_s28   ;;  %s3436_s27 = sphi %s3503_s27, %s4215_s27   ;;  %s3432_s26 = sphi %s3501_s26, %s4214_s26   ;;  %s3428_s25 = sphi %s3499_s25, %s4213_s25   ;;  %s3424_s24 = sphi %s3497_s24, %s4212_s24  }
   0x5   : > { %s32_s9 = sadd.s32 1, %s3440_s28  ;;  %s206_s10 = sadd.s32 1, %s3432_s26 }
   0x6   : > { %p34_p0 = scmp.ge.s32.totalorder %s32_s9, 2  ;;  %p216_p1 = scmp.ne.s32.totalorder %s3432_s26, %s3428_s25 }
   0x7   : > { %p217_p2 = scmp.eq.s32.totalorder %s3279_s30, 1  ;;  %p222_p3 = scmp.ne.s32.totalorder %s3428_s25, %s3424_s24 }
   0x8   : > { %s4218_s9 = smov (%p34_p0, %s32_s9), 0  ;;  %p223_p5 = scmp.eq.s32.totalorder %s3280_s8, 1 }
   0x9   : > { %p3537_p4 = por %p217_p2, %p216_p1  ;;  %s203_s12 = ssub.s32 %s3440_s28, %s4218_s9 }
   0xa   : > { %p3286_p6 = scmp.ge.s32.totalorder %s3444_s29, 1  ;;  %p204_p7 = scmp.eq.s32.totalorder %s203_s12, 0 }
   0xb   : > { %p3544_p8 = por %p223_p5, %p222_p3  ;;  %p279_p9 = scmp.lt.s32.totalorder %s3444_s29, 3 }
   0xc   : > { %s3550_s14 = scalar_select %p204_p7, %s3432_s26, %s206_s10  }
   0xd   : > { %p280_p10 = pnand %p3286_p6, %p279_p9 }
   0xe   : > { %p335_p11 = scmp.lt.s32.totalorder (!%p280_p10), %s3436_s27, 1  ;;  %s3448_s30 = smov (!%p280_p10), 1  }
   0xf   : > { %283 = sbr.rel (%p280_p10) target bundleno = 1286 (0x506), region = 48  ;;  %s3449_s8 = smov (!%p280_p10), 2  }
  0x10   : > { %s3450_s10 = smov (!%p280_p10), 127   ;;  %s3451_s12 = smov (!%p280_p10), 126  }
  0x11   : > { %s3452_s17 = smov (!%p280_p10), 32   ;;  %s3453_s18 = smov (!%p280_p10), 16  }
  0x14   : > { %v347_v0 = vld [vmem:[%s4104_s0] sm:$0x3]  ;;  %vm356_vm0 = vcmask 31744   ;;  %v3446_v1 = vmov 0.0   ;;  %s336_s19 = scalar_select %p335_p11, %s3436_s27, 1  ;;  %v3447_v5 = vmov 0   ;;  %v878_v61 = vlaneseq }
  0x15   : > { %431 = vmatprep.mubr.f32.mxu0 %v3446_v1  ;;  %v358_v2 = vsel %vm356_vm0, %v347_v0, 0  ;;  %517 = vmatprep.mubr.f32.mxu1 %v3446_v1  ;;  %v348_v3 = vld [vmem:[%s4105_s1] sm:$0x3]  ;;  %vm360_vm1 = vcmask 1043456  }
  0x16   : > { %v432_v4 = vand.u32 4294901760, %v358_v2  ;;  %3365 = vset.pattern.permute.xlu0 %v3447_v5  ;;  %3366 = vset.pattern.permute.xlu1 %v3447_v5  ;;  %s3298_s20 = sshll.u32 %s336_s19, 3  ;;  %v840_v59 = vld [vmem:[%s4108_s4] sm:$0x3]  ;;  %v885_v0 = vshrl.u32 %v878_v61, 7  ;;  %s3454_s19 = smov 112  }
  0x17   : > { %351 = vperm.xlu0 %3365, %v348_v3   ;;  %s339_s23 = scalar_lea.vmem %s4110_s6, %s3298_s20  ;;  %v842_v60 = vadd.s32 4294967294, %v840_v59  ;;  %v846_v62 = vadd.s32 4294967295, %v840_v59  ;;  %v850_v63 = vadd.s32 1, %v840_v59  ;;  %s3455_s20 = smov 96  }
  0x18   : > { %v433_v6 = vsub.f32 %v358_v2, %v432_v4  ;;  %v346_v7 = vld [vmem:[%s339_s23] sm:$0xff]  ;;  %v854_v2 = vadd.s32 2, %v840_v59  ;;  %v3596_v3 = vsub.s32 0, %v885_v0 }
  0x19   : > { %v355_v9 = vcombine.high %v346_v7, %v346_v7  ;;  %v361_v10 = vsel %vm360_vm1, %v346_v7, 0  ;;  %vm843_vm2 = vcmp.ge.s32.totalorder %v842_v60, 0  ;;  %vm844_vm3 = vcmp.lt.s32.totalorder %v842_v60, 16 }
  0x1a   : > { %v434_v8 = vand.u32 4294901760, %v433_v6  ;;  %v397_v11 = vand.u32 4294901760, %v361_v10  ;;  %vm847_vm4 = vcmp.ge.s32.totalorder %v846_v62, 0  ;;  %vm848_vm5 = vcmp.lt.s32.totalorder %v846_v62, 16  ;;  %vm845_vm6 = vmand %vm843_vm2, %vm844_vm3 }
  0x1b   : > { %v363_v13 = vsel %vm360_vm1, %v355_v9, 0  ;;  %vm851_vm7 = vcmp.ge.s32.totalorder %v850_v63, 0  ;;  %vm852_vm8 = vcmp.lt.s32.totalorder %v850_v63, 16  ;;  %vm849_vm9 = vmand %vm847_vm4, %vm848_vm5  ;;  %vm855_vm11 = vcmp.ge.s32.totalorder %v854_v2, 0 }
  0x1c   : > { %v435_v12 = vsub.f32 %v433_v6, %v434_v8  ;;  %v395_v14 = vand.u32 4294901760, %v363_v13  ;;  %v480_v16 = vsub.f32 %v361_v10, %v397_v11  ;;  %vm853_vm10 = vmand %vm851_vm7, %vm852_vm8  ;;  %v905_v7 = vsel %vm849_vm9, 1, %v3447_v5 }
  0x1d   : > { %vm856_vm12 = vcmp.lt.s32.totalorder %v854_v2, 16 }
  0x1e   : > { %v436_v15 = vand.u32 4294901760, %v435_v12  ;;  %396 = vmatprep.subr.mxu0 %v395_v14  ;;  %v474_v17 = vsub.f32 %v363_v13, %v395_v14  ;;  %v481_v18 = vand.u32 4294901760, %v480_v16  ;;  %vm857_vm13 = vmand %vm855_vm11, %vm856_vm12 }
  0x1f   : > { %398 = vmatpush1.msra.mxu0 %v397_v11 }
  0x20   : > { %437 = vmatmul.mubr.f32.vlgmr.msra.gmra.mxu0 %v436_v15  ;;  %v475_v19 = vand.u32 4294901760, %v474_v17  ;;  %557 = vmatprep.subr.mxu0 %v474_v17  ;;  %v482_v20 = vsub.f32 %v480_v16, %v481_v18 }
  0x21   : > { %560 = vmatpush1.msra.mxu0 %v480_v16  ;;  %593 = vmatprep.mubr.f32.mxu0 %v3446_v1 }
  0x22   : > { %v476_v21 = vsub.f32 %v474_v17, %v475_v19  ;;  %711 = vmatprep.subr.mxu0 %v475_v19  ;;  %v483_v22 = vand.u32 4294901760, %v482_v20 }
  0x24   : > { %v477_v23 = vand.u32 4294901760, %v476_v21  ;;  %596 = vmatmul.mubr.f32.vlgmr.msra.gmra.mxu0 %v433_v6  ;;  %v883_v6 = vsel %vm845_vm6, 1, %v3447_v5 }
  0x25   : > { %715 = vmatpush1.msra.mxu0 %v481_v18  ;;  %748 = vmatprep.mubr.f32.mxu0 %v3446_v1  ;;  %v887_v9 = vrot.slane %v883_v6, %v3596_v3 }
  0x26   : > { %478 = vmatprep.subr.mxu1 %v477_v23 }
  0x27   : > { %484 = vmatpush1.msra.mxu1 %v483_v22  ;;  %vm3613_vm0 = vcmp.eq.s32.totalorder %v887_v9, 1  ;;  %v4139_v22 = vmov 0  ;;  %v3290_v9 = vld [vmem:[%s4106_s2 + $0x8] sm:$0xff] }
  0x28   : > { %519 = vmatmul.mubr.f32.vlgmr.msra.gmra.mxu1 %v432_v4  ;;  %633 = vmatprep.subr.mxu1 %v395_v14 }
  0x29   : > { %635 = vmatpush1.msra.mxu1 %v397_v11  ;;  %668 = vmatprep.mubr.f32.mxu1 %v3446_v1 }
  0x2a   : > { %750 = vmatmul.mubr.f32.vlgmr.msra.gmra.mxu0 %v432_v4  ;;  %787 = vmatprep.subr.mxu1 %v395_v14  ;;  %v909_v14 = vrot.slane %v905_v7, %v3596_v3 }
  0x2b   : > { %1292 = vmatprep.mubr.f32.mxu0 %v3446_v1 }
  0x2c   : > { %672 = vmatmul.mubr.f32.vlgmr.msra.gmra.mxu1 %v434_v8  ;;  %v3602_v8 = vand.u32 127, %v878_v61  ;;  %vm3621_vm2 = vcmp.eq.s32.totalorder %v909_v14, 1  ;;  %v841_v61 = vld [vmem:[%s4109_s5] sm:$0x3] }
  0x2d   : > { %789 = vmatpush1.msra.mxu1 %v397_v11  ;;  %822 = vmatprep.mubr.f32.mxu1 %v3446_v1  ;;  %v927_v11 = vsel %vm853_vm10, 1, %v3447_v5  ;;  %v858_v62 = vadd.s32 4294967294, %v841_v61  ;;  %v862_v63 = vadd.s32 4294967295, %v841_v61  ;;  %v870_v2 = vadd.s32 2, %v841_v61 }
  0x2e   : > { %vm4115_vm14 = vcmp.lt.s32.totalorder %v3602_v8, 2  ;;  %vm4114_vm15 = vcmp.lt.s32.totalorder %v3602_v8, 1  ;;  %v931_v16 = vrot.slane %v927_v11, %v3596_v3  ;;  %vm4113_vm4 = vcmp.lt.s32.totalorder %v3602_v8, 127 }
  0x2f   : > { %vm4112_vm7 = vcmp.lt.s32.totalorder %v3602_v8, 126  ;;  %vm859_vm10 = vcmp.ge.s32.totalorder %v858_v62, 0  ;;  %vm860_vm11 = vcmp.lt.s32.totalorder %v858_v62, 16 }
  0x30   : > { %824 = vmatmul.mubr.f32.vlgmr.msra.gmra.mxu1 %v432_v4  ;;  %v3598_v4 = vsub.s32 1, %v885_v0  ;;  %vm3643_vm5 = vcmp.eq.s32.totalorder %v931_v16, 1  ;;  %v866_v0 = vadd.s32 1, %v841_v61  ;;  %vm861_vm12 = vmand %vm859_vm10, %vm860_vm11  ;;  %vm4128_vm10 = vcmp.lt.s32.totalorder %v3602_v8, 32 }
  0x31   : > { %1378 = vmatprep.mubr.f32.mxu1 %v3446_v1 }
  0x32   : > { %v891_v10 = vrot.slane %v883_v6, %v3598_v4  ;;  %v913_v15 = vrot.slane %v905_v7, %v3598_v4  ;;  %v935_v17 = vrot.slane %v927_v11, %v3598_v4  ;;  %v971_v6 = vsel %vm861_vm12, 1, %v3447_v5 }
  0x33   : > { %v975_v7 = vrot.slane %v971_v6, %v3596_v3 }
  0x34   : > { %vm3617_vm1 = vcmp.eq.s32.totalorder %v891_v10, 1  ;;  %vm3625_vm3 = vcmp.eq.s32.totalorder %v913_v15, 1  ;;  %vm3647_vm6 = vcmp.eq.s32.totalorder %v935_v17, 1  ;;  %v979_v10 = vrot.slane %v971_v6, %v3598_v4 }
  0x35   : > { %v4140_v22 = vsel %vm3625_vm3, 4294967295, %v4139_v22 }
  0x92   : > { %v352_v25 = vpop.permute.xlu0 %351 }
  0xe0   : > { %v438_v24 = vpop.f32.mrf.mxu0 }
  0xe1   : > { %v439_v28 = vadd.f32 %v438_v24, %v352_v25  ;;  %v949_v24 = vsel %vm857_vm13, 1, %v3447_v5  ;;  %vm863_vm13 = vcmp.ge.s32.totalorder %v862_v63, 0 }
  0xe2   : > { %v440_v26 = vpop.f32.mrf.mxu0 }
  0xe3   : > { %v441_v31 = vadd.f32 %v440_v26, %v352_v25 }
  0xe4   : > { %v597_v27 = vpop.f32.mrf.mxu0 }
  0xe6   : > { %v599_v30 = vpop.f32.mrf.mxu0 }
  0xe8   : > { %v520_v29 = vpop.f32.mrf.mxu1 }
  0xe9   : > { %v521_v32 = vadd.f32 %v520_v29, %v439_v28 }
  0xea   : > { %v522_v33 = vpop.f32.mrf.mxu1  ;;  %v751_v37 = vpop.f32.mrf.mxu0 }
  0xeb   : > { %v598_v34 = vadd.f32 %v597_v27, %v521_v32  ;;  %v523_v35 = vadd.f32 %v522_v33, %v441_v31  ;;  %v4141_v31 = vmov 0  ;;  %v4143_v32 = vmov 0 }
  0xec   : > { %v673_v36 = vpop.f32.mrf.mxu1  ;;  %v753_v43 = vpop.f32.mrf.mxu0  ;;  %v4142_v31 = vsel %vm3643_vm5, 4294967295, %v4141_v31  ;;  %v4144_v32 = vsel %vm3647_vm6, 4294967295, %v4143_v32 }
  0xed   : > { %v600_v38 = vadd.f32 %v599_v30, %v523_v35  ;;  %v674_v39 = vadd.f32 %v673_v36, %v598_v34  ;;  %v953_v35 = vrot.slane %v949_v24, %v3596_v3  ;;  %v957_v36 = vrot.slane %v949_v24, %v3598_v4 }
  0xee   : > { %v675_v40 = vpop.f32.mrf.mxu1 }
  0xef   : > { %v752_v41 = vadd.f32 %v751_v37, %v674_v39  ;;  %v676_v42 = vadd.f32 %v675_v40, %v600_v38  ;;  %vm3668_vm8 = vcmp.eq.s32.totalorder %v953_v35, 1  ;;  %vm3672_vm9 = vcmp.eq.s32.totalorder %v957_v36, 1 }
  0xf0   : > { %v825_v44 = vpop.f32.mrf.mxu1 }
  0xf1   : > { %v754_v45 = vadd.f32 %v753_v43, %v676_v42  ;;  %v826_v46 = vadd.f32 %v825_v44, %v752_v41 }
  0xf2   : > { %v827_v47 = vpop.f32.mrf.mxu1 }
  0xf3   : > { %v830_v48 = vadd.f32 3.0, %v826_v46  ;;  %v828_v49 = vadd.f32 %v827_v47, %v754_v45  ;;  %v4145_v47 = vmov 0 }
  0xf4   : > { %v4146_v47 = vsel %vm3668_vm8, 4294967295, %v4145_v47 }
  0xf5   : > { %v832_v50 = vmax.f32 %v830_v48, 0.0  ;;  %v831_v51 = vadd.f32 3.0, %v828_v49  ;;  %v4147_v48 = vmov 0 }
  0xf6   : > { %v4148_v48 = vsel %vm3672_vm9, 4294967295, %v4147_v48 }
  0xf7   : > { %v834_v52 = vmin.f32 %v832_v50, 6.0  ;;  %v833_v53 = vmax.f32 %v831_v51, 0.0 }
  0xf9   : > { %v836_v54 = vmul.f32 %v834_v52, %v826_v46  ;;  %v835_v55 = vmin.f32 %v833_v53, 6.0 }
  0xfb   : > { %v3573_v56 = vmul.f32 0.16666667, %v836_v54  ;;  %v837_v57 = vmul.f32 %v835_v55, %v828_v49 }
  0xfd   : > { %898 = vrot.lane.b32.xlu1 %v3573_v56, %s3448_s30  ;;  %874 = vrot.lane.b32.xlu0 %v3573_v56, %s3449_s8  ;;  %v3579_v58 = vmul.f32 0.16666667, %v837_v57 }
 0x101   : > { %876 = vrot.lane.b32.xlu1 %v3579_v58, %s3449_s8  ;;  %900 = vrot.lane.b32.xlu0 %v3579_v58, %s3448_s30 }
 0x105   : > { %920 = vrot.lane.b32.xlu1 %v3573_v56, %s3450_s10  ;;  %922 = vrot.lane.b32.xlu0 %v3579_v58, %s3450_s10 }
 0x109   : > { %942 = vrot.lane.b32.xlu1 %v3573_v56, %s3451_s12  ;;  %944 = vrot.lane.b32.xlu0 %v3579_v58, %s3451_s12 }
 0x16f   : > { %v899_v12 = vpop.permute.xlu1 %898  ;;  %v875_v13 = vpop.permute.xlu0 %874 }
 0x173   : > { %v877_v20 = vpop.permute.xlu1 %876  ;;  %v901_v23 = vpop.permute.xlu0 %900 }
 0x174   : > { %v881_v25 = vsel %vm4115_vm14, %v875_v13, %v877_v20  ;;  %v882_v26 = vsel %vm4115_vm14, %v877_v20, %v875_v13  ;;  %v903_v27 = vsel %vm4114_vm15, %v899_v12, %v901_v23  ;;  %v904_v28 = vsel %vm4114_vm15, %v901_v23, %v899_v12 }
 0x175   : > { %v894_v29 = vsel %vm3613_vm0, %v882_v26, -1e+30  ;;  %v895_v30 = vsel %vm3617_vm1, %v881_v25, -1e+30  ;;  %v916_v37 = vsel %vm3621_vm2, %v904_v28, -1e+30 }
 0x176   : > { %v896_v33 = vmax.f32 %v3573_v56, %v894_v29  ;;  %v897_v34 = vmax.f32 %v3579_v58, %v895_v30  ;;  %v917_v38 = vsel %vm3625_vm3, %v903_v27, -1e+30  ;;  %vm868_vm15 = vcmp.lt.s32.totalorder %v866_v0, 16 }
 0x177   : > { %v921_v39 = vpop.permute.xlu1 %920  ;;  %v923_v40 = vpop.permute.xlu0 %922 }
 0x178   : > { %v918_v41 = vmax.f32 %v896_v33, %v916_v37  ;;  %v919_v42 = vmax.f32 %v897_v34, %v917_v38  ;;  %v925_v43 = vsel %vm4113_vm4, %v921_v39, %v923_v40  ;;  %v926_v44 = vsel %vm4113_vm4, %v923_v40, %v921_v39 }
 0x179   : > { %v938_v45 = vsel %vm3643_vm5, %v925_v43, -1e+30  ;;  %v939_v46 = vsel %vm3647_vm6, %v926_v44, -1e+30  ;;  %vm867_vm4 = vcmp.ge.s32.totalorder %v866_v0, 0  ;;  %vm872_vm6 = vcmp.lt.s32.totalorder %v870_v2, 16 }
 0x17a   : > { %v940_v51 = vmax.f32 %v918_v41, %v938_v45  ;;  %v941_v52 = vmax.f32 %v919_v42, %v939_v46  ;;  %vm4129_vm5 = vcmask 15360  }
 0x17b   : > { %v943_v49 = vpop.permute.xlu1 %942  ;;  %v945_v50 = vpop.permute.xlu0 %944  ;;  %v1217_v15 = vsel %vm4129_vm5, %v3290_v9, 0 }
 0x17c   : > { %v947_v53 = vsel %vm4112_vm7, %v943_v49, %v945_v50  ;;  %v948_v54 = vsel %vm4112_vm7, %v945_v50, %v943_v49  ;;  %vm864_vm7 = vcmp.lt.s32.totalorder %v862_v63, 16  ;;  %v3735_v29 = vand.u32 4294901760, %v1217_v15 }
 0x17d   : > { %v960_v55 = vsel %vm3668_vm8, %v947_v53, -1e+30  ;;  %v961_v57 = vsel %vm3672_vm9, %v948_v54, -1e+30  ;;  %vm865_vm14 = vmand %vm863_vm13, %vm864_vm7  ;;  %vm871_vm8 = vcmp.ge.s32.totalorder %v870_v2, 0  ;;  %vm3723_vm7 = vcmp.eq.s32.totalorder %v979_v10, 1 }
 0x17e   : > { %v3684_v59 = vmax.f32 %v940_v51, %v960_v55  ;;  %v3686_v60 = vmax.f32 %v941_v52, %v961_v57  ;;  %vm869_vm9 = vmand %vm867_vm4, %vm868_vm15  ;;  %v993_v11 = vsel %vm865_vm14, 1, %v3447_v5  ;;  %vm3717_vm4 = vcmp.eq.s32.totalorder %v975_v7, 1  ;;  %v1212_v52 = vld [vmem:[%s4106_s2] sm:$0xff] }
 0x17f   : > { %v1015_v12 = vsel %vm869_vm9, 1, %v3447_v5  ;;  %vm873_vm15 = vmand %vm871_vm8, %vm872_vm6  ;;  %v997_v17 = vrot.slane %v993_v11, %v3596_v3  ;;  %v1001_v20 = vrot.slane %v993_v11, %v3598_v4  ;;  %vm4124_vm14 = vcmp.lt.s32.totalorder %v3602_v8, 16 }
 0x180   : > { %966 = vrot.lane.b32.xlu0 %v3686_v60, %s3452_s17  ;;  %964 = vrot.lane.b32.xlu1 %v3684_v59, %s3452_s17  ;;  %v1019_v24 = vrot.slane %v1015_v12, %v3596_v3  ;;  %v1023_v25 = vrot.slane %v1015_v12, %v3598_v4  ;;  %v1037_v28 = vsel %vm873_vm15, 1, %v3447_v5  ;;  %vm4125_vm9 = vcmp.lt.s32.totalorder %v3602_v8, 112 }
 0x181   : > { %vm3737_vm6 = vcmp.eq.s32.totalorder %v997_v17, 1  ;;  %vm3741_vm8 = vcmp.eq.s32.totalorder %v1001_v20, 1  ;;  %v1041_v39 = vrot.slane %v1037_v28, %v3596_v3  ;;  %v1045_v42 = vrot.slane %v1037_v28, %v3598_v4 }
 0x182   : > { %vm3755_vm11 = vcmp.eq.s32.totalorder %v1019_v24, 1  ;;  %vm3759_vm12 = vcmp.eq.s32.totalorder %v1023_v25, 1  ;;  %v3765_v43 = vsub.f32 %v1217_v15, %v3735_v29  ;;  %vm4127_vm13 = vcmp.lt.s32.totalorder %v3602_v8, 96 }
 0x183   : > { %vm3785_vm15 = vcmp.eq.s32.totalorder %v1041_v39, 1  ;;  %v1692_v0 = vsel %vm4129_vm5, %v1212_v52, 0 }
 0x184   : > { %988 = vrot.lane.b32.xlu0 %v3686_v60, %s3453_s18  ;;  %986 = vrot.lane.b32.xlu1 %v3684_v59, %s3453_s18  ;;  %v1295_v61 = vand.u32 4294901760, %v3765_v43  ;;  %v3810_v15 = vand.u32 4294901760, %v1692_v0 }
 0x188   : > { %1010 = vrot.lane.b32.xlu0 %v3686_v60, %s3454_s19  ;;  %1008 = vrot.lane.b32.xlu1 %v3684_v59, %s3454_s19 }
 0x18c   : > { %1032 = vrot.lane.b32.xlu0 %v3686_v60, %s3455_s20  ;;  %1030 = vrot.lane.b32.xlu1 %v3684_v59, %s3455_s20 }
 0x1f2   : > { %v967_v13 = vpop.permute.xlu0 %966  ;;  %v965_v14 = vpop.permute.xlu1 %964 }
 0x1f3   : > { %v969_v26 = vsel %vm4128_vm10, %v965_v14, %v967_v13  ;;  %v970_v27 = vsel %vm4128_vm10, %v967_v13, %v965_v14  ;;  %v1296_v14 = vsub.f32 %v3765_v43, %v1295_v61  ;;  %vm4167_vm10 = vcmp.lt.s32.totalorder %v3602_v8, 1 }
 0x1f4   : > { %v982_v5 = vsel %vm3717_vm4, %v970_v27, -1e+30  ;;  %v983_v38 = vsel %vm3723_vm7, %v969_v26, -1e+30  ;;  %vm4168_vm5 = vmmov %vm4167_vm10 }
 0x1f5   : > { %v984_v49 = vmax.f32 %v3684_v59, %v982_v5  ;;  %v985_v50 = vmax.f32 %v3686_v60, %v983_v38  ;;  %v1297_v27 = vand.u32 4294901760, %v1296_v14 }
 0x1f6   : > { %v989_v30 = vpop.permute.xlu0 %988  ;;  %v987_v33 = vpop.permute.xlu1 %986 }
 0x1f7   : > { %v991_v36 = vsel %vm4124_vm14, %v987_v33, %v989_v30  ;;  %v992_v37 = vsel %vm4124_vm14, %v989_v30, %v987_v33  ;;  %vm3789_vm14 = vcmp.eq.s32.totalorder %v1045_v42, 1 }
 0x1f8   : > { %v1004_v44 = vsel %vm3737_vm6, %v992_v37, -1e+30  ;;  %v1005_v45 = vsel %vm3741_vm8, %v991_v36, -1e+30  ;;  %v3827_v37 = vsub.f32 %v1692_v0, %v3810_v15 }
 0x1f9   : > { %v1006_v57 = vmax.f32 %v984_v49, %v1004_v44  ;;  %v1007_v59 = vmax.f32 %v985_v50, %v1005_v45 }
 0x1fa   : > { %v1011_v3 = vpop.permute.xlu0 %1010  ;;  %v1009_v46 = vpop.permute.xlu1 %1008  ;;  %v1769_v44 = vand.u32 4294901760, %v3827_v37 }
 0x1fb   : > { %v1013_v51 = vsel %vm4125_vm9, %v1009_v46, %v1011_v3  ;;  %v1014_v4 = vsel %vm4125_vm9, %v1011_v3, %v1009_v46  ;;  %vm4126_vm9 = vcmask 1041408  }
 0x1fc   : > { %v1026_v53 = vsel %vm3755_vm11, %v1013_v51, -1e+30  ;;  %v1027_v54 = vsel %vm3759_vm12, %v1014_v4, -1e+30  ;;  %v1698_v24 = vsel %vm4126_vm9, %v3579_v58, 0  ;;  %v1695_v28 = vsel %vm4126_vm9, %v3573_v56, 0 }
 0x1fd   : > { %v1028_v2 = vmax.f32 %v1006_v57, %v1026_v53  ;;  %v1029_v6 = vmax.f32 %v1007_v59, %v1027_v54  ;;  %v3824_v36 = vand.u32 4294901760, %v1698_v24  ;;  %v1732_v56 = vand.u32 4294901760, %v1695_v28 }
 0x1fe   : > { %v1033_v62 = vpop.permute.xlu0 %1032  ;;  %v1031_v63 = vpop.permute.xlu1 %1030  ;;  %v1770_v49 = vsub.f32 %v3827_v37, %v1769_v44 }
 0x1ff   : > { %v1035_v7 = vsel %vm4127_vm13, %v1031_v63, %v1033_v62  ;;  %v1036_v9 = vsel %vm4127_vm13, %v1033_v62, %v1031_v63  ;;  %v1809_v42 = vsub.f32 %v1698_v24, %v3824_v36  ;;  %v1815_v46 = vsub.f32 %v1695_v28, %v1732_v56 }
 0x200   : > { %v1048_v10 = vsel %vm3785_vm15, %v1035_v7, -1e+30  ;;  %v1049_v11 = vsel %vm3789_vm14, %v1036_v9, -1e+30  ;;  %v1771_v4 = vand.u32 4294901760, %v1770_v49 }
 0x201   : > { %v3803_v12 = vmax.f32 %v1028_v2, %v1048_v10  ;;  %v3805_v13 = vmax.f32 %v1029_v6, %v1049_v11  ;;  %v1810_v50 = vand.u32 4294901760, %v1809_v42  ;;  %v1816_v51 = vand.u32 4294901760, %v1815_v46 }
 0x203   : > { %1054 = vrot.lane.b32.xlu0 %v3805_v13, %s3449_s8  ;;  %1052 = vrot.lane.b32.xlu1 %v3803_v12, %s3449_s8  ;;  %v1224_v17 = vsel %vm4126_vm9, %v3805_v13, 0  ;;  %v1221_v20 = vsel %vm4126_vm9, %v3803_v12, 0  ;;  %v1811_v52 = vsub.f32 %v1809_v42, %v1810_v50  ;;  %v1817_v53 = vsub.f32 %v1815_v46, %v1816_v51 }
 0x204   : > { %v1256_v25 = vand.u32 4294901760, %v1224_v17  ;;  %v1258_v26 = vand.u32 4294901760, %v1221_v20  ;;  %vm4165_vm9 = vcmp.lt.s32.totalorder %v3602_v8, 2 }
 0x205   : > { %v1812_v54 = vand.u32 4294901760, %v1811_v52  ;;  %v1818_v57 = vand.u32 4294901760, %v1817_v53  ;;  %vm4166_vm13 = vmmov %vm4165_vm9 }
 0x206   : > { %1257 = vmatprep.subr.mxu0 %v1256_v25  ;;  %v1335_v30 = vsub.f32 %v1224_v17, %v1256_v25  ;;  %v1341_v33 = vsub.f32 %v1221_v20, %v1258_v26 }
 0x207   : > { %1064 = vrot.lane.b32.xlu0 %v3805_v13, %s3448_s30  ;;  %1062 = vrot.lane.b32.xlu1 %v3803_v12, %s3448_s30 }
 0x208   : > { %1259 = vmatpush1.msra.mxu0 %v1258_v26  ;;  %v1336_v58 = vand.u32 4294901760, %v1335_v30  ;;  %v1342_v5 = vand.u32 4294901760, %v1341_v33 }
 0x209   : > { %1298 = vmatmul.mubr.f32.vlgmr.msra.gmra.mxu0 %v1297_v27  ;;  %1418 = vmatprep.subr.mxu0 %v1335_v30 }
 0x20a   : > { %1421 = vmatpush1.msra.mxu0 %v1341_v33  ;;  %1454 = vmatprep.mubr.f32.mxu0 %v3446_v1  ;;  %v1337_v38 = vsub.f32 %v1335_v30, %v1336_v58  ;;  %v1343_v39 = vsub.f32 %v1341_v33, %v1342_v5 }
 0x20b   : > { %1572 = vmatprep.subr.mxu0 %v1336_v58  ;;  %1074 = vrot.lane.b32.xlu0 %v3805_v13, %s3450_s10 }
 0x20c   : > { %1072 = vrot.lane.b32.xlu1 %v3803_v12, %s3450_s10  ;;  %v1338_v45 = vand.u32 4294901760, %v1337_v38  ;;  %v1344_v3 = vand.u32 4294901760, %v1343_v39  ;;  %v3291_v39 = vld [vmem:[%s4106_s2 + $0x10] sm:$0xff] }
 0x20d   : > { %1457 = vmatmul.mubr.f32.vlgmr.msra.gmra.mxu0 %v3765_v43 }
 0x20e   : > { %1576 = vmatpush1.msra.mxu0 %v1342_v5  ;;  %1339 = vmatprep.subr.mxu1 %v1338_v45 }
 0x20f   : > { %1731 = vmatprep.subr.mxu0 %v3824_v36  ;;  %1084 = vrot.lane.b32.xlu0 %v3805_v13, %s3451_s12 }
 0x210   : > { %1082 = vrot.lane.b32.xlu1 %v3803_v12, %s3451_s12  ;;  %1345 = vmatpush1.msra.mxu1 %v1344_v3 }
 0x211   : > { %1609 = vmatprep.mubr.f32.mxu0 %v3446_v1  ;;  %1380 = vmatmul.mubr.f32.vlgmr.msra.gmra.mxu1 %v3735_v29 }
 0x212   : > { %1494 = vmatprep.subr.mxu1 %v1256_v25  ;;  %1611 = vmatmul.mubr.f32.vlgmr.msra.gmra.mxu0 %v3735_v29 }
 0x213   : > { %1733 = vmatpush1.msra.mxu0 %v1732_v56  ;;  %1496 = vmatpush1.msra.mxu1 %v1258_v26 }
 0x214   : > { %1892 = vmatprep.subr.mxu0 %v1809_v42  ;;  %1648 = vmatprep.subr.mxu1 %v1256_v25 }
 0x215   : > { %1529 = vmatprep.mubr.f32.mxu1 %v3446_v1  ;;  %1766 = vmatprep.mubr.f32.mxu0 %v3446_v1 }
 0x216   : > { %1533 = vmatmul.mubr.f32.vlgmr.msra.gmra.mxu1 %v1295_v61  ;;  %1772 = vmatmul.mubr.f32.vlgmr.msra.gmra.mxu0 %v1771_v4 }
 0x217   : > { %1650 = vmatpush1.msra.mxu1 %v1258_v26  ;;  %1895 = vmatpush1.msra.mxu0 %v1815_v46 }
 0x218   : > { %1813 = vmatprep.subr.mxu1 %v1812_v54  ;;  %2046 = vmatprep.subr.mxu0 %v1810_v50 }
 0x219   : > { %1683 = vmatprep.mubr.f32.mxu1 %v3446_v1  ;;  %1928 = vmatprep.mubr.f32.mxu0 %v3446_v1 }
 0x21a   : > { %1685 = vmatmul.mubr.f32.vlgmr.msra.gmra.mxu1 %v3735_v29  ;;  %1931 = vmatmul.mubr.f32.vlgmr.msra.gmra.mxu0 %v3827_v37 }
 0x21b   : > { %1819 = vmatpush1.msra.mxu1 %v1818_v57  ;;  %2050 = vmatpush1.msra.mxu0 %v1816_v51 }
 0x21c   : > { %1968 = vmatprep.subr.mxu1 %v3824_v36  ;;  %1852 = vmatprep.mubr.f32.mxu1 %v3446_v1 }
 0x21d   : > { %2083 = vmatprep.mubr.f32.mxu0 %v3446_v1 }
 0x21e   : > { %1854 = vmatmul.mubr.f32.vlgmr.msra.gmra.mxu1 %v3810_v15  ;;  %2085 = vmatmul.mubr.f32.vlgmr.msra.gmra.mxu0 %v3810_v15 }
 0x21f   : > { %1970 = vmatpush1.msra.mxu1 %v1732_v56  ;;  %2003 = vmatprep.mubr.f32.mxu1 %v3446_v1 }
 0x220   : > { %2122 = vmatprep.subr.mxu1 %v3824_v36  ;;  %2242 = vmatprep.mubr.f32.mxu0 %v3446_v1 }
 0x222   : > { %2007 = vmatmul.mubr.f32.vlgmr.msra.gmra.mxu1 %v1769_v44 }
 0x223   : > { %2124 = vmatpush1.msra.mxu1 %v1732_v56  ;;  %2157 = vmatprep.mubr.f32.mxu1 %v3446_v1 }
 0x226   : > { %2159 = vmatmul.mubr.f32.vlgmr.msra.gmra.mxu1 %v3810_v15 }
 0x227   : > { %2328 = vmatprep.mubr.f32.mxu1 %v3446_v1 }
 0x275   : > { %v1055_v29 = vpop.permute.xlu0 %1054  ;;  %v1053_v43 = vpop.permute.xlu1 %1052 }
 0x276   : > { %v1056_v59 = vsel %vm4165_vm9, %v1053_v43, %v1055_v29  ;;  %v1057_v61 = vsel %vm4166_vm13, %v1055_v29, %v1053_v43  ;;  %vm4171_vm9 = vnez %v4142_v31  ;;  %vm4172_vm13 = vnez %v4144_v32 }
 0x277   : > { %v1058_v6 = vsel %vm3613_vm0, %v1057_v61, -1e+30  ;;  %v1059_v7 = vsel %vm3617_vm1, %v1056_v59, -1e+30 }
 0x278   : > { %v1060_v15 = vmax.f32 %v3803_v12, %v1058_v6  ;;  %v1061_v17 = vmax.f32 %v3805_v13, %v1059_v7 }
 0x279   : > { %v1065_v62 = vpop.permute.xlu0 %1064  ;;  %v1063_v63 = vpop.permute.xlu1 %1062 }
 0x27a   : > { %v1066_v0 = vsel %vm4167_vm10, %v1063_v63, %v1065_v62  ;;  %v1067_v2 = vsel %vm4168_vm5, %v1065_v62, %v1063_v63  ;;  %vm4169_vm5 = vcmp.lt.s32.totalorder %v3602_v8, 127 }
 0x27b   : > { %v1068_v10 = vsel %vm3621_vm2, %v1067_v2, -1e+30  ;;  %v1069_v11 = vsel %vm3625_vm3, %v1066_v0, -1e+30  ;;  %vm4170_vm10 = vmmov %vm4169_vm5  ;;  %vm4173_vm3 = vcmp.lt.s32.totalorder %v3602_v8, 126 }
 0x27c   : > { %v1070_v27 = vmax.f32 %v1060_v15, %v1068_v10  ;;  %v1071_v28 = vmax.f32 %v1061_v17, %v1069_v11 }
 0x27d   : > { %v1075_v9 = vpop.permute.xlu0 %1074 }
 0x27e   : > { %v1073_v14 = vpop.permute.xlu1 %1072 }
 0x27f   : > { %v1076_v20 = vsel %vm4169_vm5, %v1073_v14, %v1075_v9  ;;  %v1077_v24 = vsel %vm4170_vm10, %v1075_v9, %v1073_v14  ;;  %vm4174_vm5 = vmmov %vm4173_vm3  ;;  %vm4175_vm10 = vnez %v4146_v47 }
 0x280   : > { %v1078_v25 = vsel %vm4171_vm9, %v1076_v20, -1e+30  ;;  %v1079_v26 = vsel %vm4172_vm13, %v1077_v24, -1e+30  ;;  %vm4176_vm9 = vnez %v4148_v48 }
 0x281   : > { %v1085_v30 = vpop.permute.xlu0 %1084  ;;  %v1080_v36 = vmax.f32 %v1070_v27, %v1078_v25  ;;  %v1081_v12 = vmax.f32 %v1071_v28, %v1079_v26 }
 0x282   : > { %v1083_v33 = vpop.permute.xlu1 %1082 }
 0x283   : > { %v1086_v13 = vsel %vm4173_vm3, %v1083_v33, %v1085_v30  ;;  %v1087_v37 = vsel %vm4174_vm5, %v1085_v30, %v1083_v33  ;;  %vm4177_vm3 = vcmask 15360   ;;  %vm4178_vm5 = vcmp.lt.s32.totalorder %v3602_v8, 32 }
 0x284   : > { %v1088_v58 = vsel %vm4175_vm10, %v1086_v13, -1e+30  ;;  %v1089_v5 = vsel %vm4176_vm9, %v1087_v37, -1e+30  ;;  %v2168_v45 = vsel %vm4177_vm3, %v3291_v39, 0  ;;  %vm4179_vm9 = vmmov %vm4178_vm5  ;;  %vm4180_vm10 = vcmp.lt.s32.totalorder %v3602_v8, 16 }
 0x285   : > { %v1090_v56 = vmax.f32 %v1080_v36, %v1088_v58  ;;  %v1091_v38 = vmax.f32 %v1081_v12, %v1089_v5  ;;  %v3919_v49 = vand.u32 4294901760, %v2168_v45  ;;  %vm4181_vm13 = vmmov %vm4180_vm10 }
 0x287   : > { %1094 = vrot.lane.b32.xlu0 %v1091_v38, %s3452_s17  ;;  %1092 = vrot.lane.b32.xlu1 %v1090_v56, %s3452_s17  ;;  %v3930_v57 = vsub.f32 %v2168_v45, %v3919_v49 }
 0x289   : > { %v2245_v11 = vand.u32 4294901760, %v3930_v57 }
 0x28b   : > { %1104 = vrot.lane.b32.xlu0 %v1091_v38, %s3453_s18  ;;  %1102 = vrot.lane.b32.xlu1 %v1090_v56, %s3453_s18  ;;  %v2246_v33 = vsub.f32 %v3930_v57, %v2245_v11 }
 0x28d   : > { %v2247_v58 = vand.u32 4294901760, %v2246_v33 }
 0x28f   : > { %1114 = vrot.lane.b32.xlu0 %v1091_v38, %s3454_s19  ;;  %1112 = vrot.lane.b32.xlu1 %v1090_v56, %s3454_s19 }
 0x293   : > { %1124 = vrot.lane.b32.xlu0 %v1091_v38, %s3455_s20  ;;  %1122 = vrot.lane.b32.xlu1 %v1090_v56, %s3455_s20 }
 0x2f9   : > { %v1095_v42 = vpop.permute.xlu0 %1094  ;;  %v1093_v44 = vpop.permute.xlu1 %1092 }
 0x2fa   : > { %v1096_v3 = vsel %vm4178_vm5, %v1093_v44, %v1095_v42  ;;  %v1097_v46 = vsel %vm4179_vm9, %v1095_v42, %v1093_v44  ;;  %vm4182_vm9 = vcmp.lt.s32.totalorder %v3602_v8, 112  ;;  %vm4186_vm5 = vcmask 1041408  }
 0x2fb   : > { %v1098_v53 = vsel %vm3717_vm4, %v1097_v46, -1e+30  ;;  %v1099_v54 = vsel %vm3723_vm7, %v1096_v3, -1e+30 }
 0x2fc   : > { %v1100_v62 = vmax.f32 %v1090_v56, %v1098_v53  ;;  %v1101_v63 = vmax.f32 %v1091_v38, %v1099_v54 }
 0x2fd   : > { %v1105_v50 = vpop.permute.xlu0 %1104  ;;  %v1103_v51 = vpop.permute.xlu1 %1102 }
 0x2fe   : > { %v1106_v4 = vsel %vm4180_vm10, %v1103_v51, %v1105_v50  ;;  %v1107_v52 = vsel %vm4181_vm13, %v1105_v50, %v1103_v51  ;;  %vm4183_vm13 = vmmov %vm4182_vm9  ;;  %vm4184_vm10 = vcmp.lt.s32.totalorder %v3602_v8, 96 }
 0x2ff   : > { %v1108_v29 = vsel %vm3737_vm6, %v1107_v52, -1e+30  ;;  %v1109_v43 = vsel %vm3741_vm8, %v1106_v4, -1e+30  ;;  %vm4185_vm3 = vmmov %vm4184_vm10 }
 0x300   : > { %v1110_v9 = vmax.f32 %v1100_v62, %v1108_v29  ;;  %v1111_v10 = vmax.f32 %v1101_v63, %v1109_v43 }
 0x301   : > { %v1115_v59 = vpop.permute.xlu0 %1114  ;;  %v1113_v61 = vpop.permute.xlu1 %1112 }
 0x302   : > { %v1116_v0 = vsel %vm4182_vm9, %v1113_v61, %v1115_v59  ;;  %v1117_v2 = vsel %vm4183_vm13, %v1115_v59, %v1113_v61  ;;  %vm4187_vm9 = vmmov %vm4186_vm5  ;;  %vm4188_vm13 = vcmp.lt.s32.totalorder %v3602_v8, 2 }
 0x303   : > { %v1118_v6 = vsel %vm3755_vm11, %v1116_v0, -1e+30  ;;  %v1119_v7 = vsel %vm3759_vm12, %v1117_v2, -1e+30 }
 0x304   : > { %v1120_v17 = vmax.f32 %v1110_v9, %v1118_v6  ;;  %v1121_v20 = vmax.f32 %v1111_v10, %v1119_v7 }
 0x305   : > { %v1125_v14 = vpop.permute.xlu0 %1124  ;;  %v1123_v15 = vpop.permute.xlu1 %1122 }
 0x306   : > { %v1126_v24 = vsel %vm4184_vm10, %v1123_v15, %v1125_v14  ;;  %v1127_v25 = vsel %vm4185_vm3, %v1125_v14, %v1123_v15  ;;  %vm4189_vm10 = vmmov %vm4188_vm13  ;;  %vm4190_vm3 = vcmp.lt.s32.totalorder %v3602_v8, 1 }
 0x307   : > { %v1128_v26 = vsel %vm3785_vm15, %v1126_v24, -1e+30  ;;  %v1129_v27 = vsel %vm3789_vm14, %v1127_v25, -1e+30 }
 0x308   : > { %v1130_v28 = vmax.f32 %v1120_v17, %v1128_v26  ;;  %v1131_v30 = vmax.f32 %v1121_v20, %v1129_v27 }
 0x30a   : > { %1134 = vrot.lane.b32.xlu0 %v1131_v30, %s3449_s8  ;;  %1132 = vrot.lane.b32.xlu1 %v1130_v28, %s3449_s8  ;;  %v2174_v36 = vsel %vm4186_vm5, %v1131_v30, 0  ;;  %v2171_v12 = vsel %vm4187_vm9, %v1130_v28, 0  ;;  %vm4191_vm5 = vmmov %vm4190_vm3  ;;  %vm4192_vm9 = vnez %v4140_v22  ;;  %s3456_s8 = smov [#allocation3]  }
 0x30b   : > { %v2206_v13 = vand.u32 4294901760, %v2174_v36  ;;  %v2208_v37 = vand.u32 4294901760, %v2171_v12 }
 0x30d   : > { %2207 = vmatprep.subr.mxu0 %v2206_v13  ;;  %v2285_v5 = vsub.f32 %v2174_v36, %v2206_v13  ;;  %v2291_v56 = vsub.f32 %v2171_v12, %v2208_v37 }
 0x30e   : > { %1144 = vrot.lane.b32.xlu0 %v1131_v30, %s3448_s30  ;;  %1142 = vrot.lane.b32.xlu1 %v1130_v28, %s3448_s30 }
 0x30f   : > { %2209 = vmatpush1.msra.mxu0 %v2208_v37  ;;  %v2286_v38 = vand.u32 4294901760, %v2285_v5  ;;  %v2292_v39 = vand.u32 4294901760, %v2291_v56 }
 0x310   : > { %2248 = vmatmul.mubr.f32.vlgmr.msra.gmra.mxu0 %v2247_v58  ;;  %2368 = vmatprep.subr.mxu0 %v2285_v5 }
 0x311   : > { %2371 = vmatpush1.msra.mxu0 %v2291_v56  ;;  %2404 = vmatprep.mubr.f32.mxu0 %v3446_v1  ;;  %v2287_v42 = vsub.f32 %v2285_v5, %v2286_v38  ;;  %v2293_v44 = vsub.f32 %v2291_v56, %v2292_v39 }
 0x312   : > { %2522 = vmatprep.subr.mxu0 %v2286_v38  ;;  %1154 = vrot.lane.b32.xlu0 %v1131_v30, %s3450_s10 }
 0x313   : > { %1152 = vrot.lane.b32.xlu1 %v1130_v28, %s3450_s10  ;;  %v2288_v45 = vand.u32 4294901760, %v2287_v42  ;;  %v2294_v3 = vand.u32 4294901760, %v2293_v44 }
 0x314   : > { %2407 = vmatmul.mubr.f32.vlgmr.msra.gmra.mxu0 %v3930_v57 }
 0x315   : > { %2526 = vmatpush1.msra.mxu0 %v2292_v39  ;;  %2289 = vmatprep.subr.mxu1 %v2288_v45 }
 0x316   : > { %1164 = vrot.lane.b32.xlu0 %v1131_v30, %s3451_s12  ;;  %2295 = vmatpush1.msra.mxu1 %v2294_v3 }
 0x317   : > { %1162 = vrot.lane.b32.xlu1 %v1130_v28, %s3451_s12  ;;  %2330 = vmatmul.mubr.f32.vlgmr.msra.gmra.mxu1 %v3919_v49 }
 0x318   : > { %2444 = vmatprep.subr.mxu1 %v2206_v13  ;;  %2479 = vmatprep.mubr.f32.mxu1 %v3446_v1 }
 0x319   : > { %2446 = vmatpush1.msra.mxu1 %v2208_v37  ;;  %2559 = vmatprep.mubr.f32.mxu0 %v3446_v1 }
 0x31a   : > { %2598 = vmatprep.subr.mxu1 %v2206_v13  ;;  %2561 = vmatmul.mubr.f32.vlgmr.msra.gmra.mxu0 %v3919_v49 }
 0x31b   : > { %2483 = vmatmul.mubr.f32.vlgmr.msra.gmra.mxu1 %v2245_v11  ;;  %2720 = vmatprep.mubr.f32.mxu0 %v3446_v1 }
 0x31c   : > { %2600 = vmatpush1.msra.mxu1 %v2208_v37  ;;  %2633 = vmatprep.mubr.f32.mxu1 %v3446_v1 }
 0x31f   : > { %2635 = vmatmul.mubr.f32.vlgmr.msra.gmra.mxu1 %v3919_v49 }
 0x320   : > { %2806 = vmatprep.mubr.f32.mxu1 %v3446_v1 }
 0x37c   : > { %v1135_v46 = vpop.permute.xlu0 %1134  ;;  %v1133_v50 = vpop.permute.xlu1 %1132 }
 0x37d   : > { %v1136_v51 = vsel %vm4188_vm13, %v1133_v50, %v1135_v46  ;;  %v1137_v4 = vsel %vm4189_vm10, %v1135_v46, %v1133_v50  ;;  %vm4193_vm13 = vcmp.lt.s32.totalorder %v3602_v8, 127 }
 0x37e   : > { %v1138_v49 = vsel %vm3613_vm0, %v1137_v4, -1e+30  ;;  %v1139_v29 = vsel %vm3617_vm1, %v1136_v51, -1e+30  ;;  %vm4194_vm10 = vmmov %vm4193_vm13  ;;  %vm4195_vm0 = vnez %v4142_v31  ;;  %vm4196_vm1 = vnez %v4144_v32 }
 0x37f   : > { %v1140_v63 = vmax.f32 %v1130_v28, %v1138_v49  ;;  %v1141_v0 = vmax.f32 %v1131_v30, %v1139_v29 }
 0x380   : > { %v1145_v52 = vpop.permute.xlu0 %1144  ;;  %v1143_v53 = vpop.permute.xlu1 %1142 }
 0x381   : > { %v1146_v54 = vsel %vm4190_vm3, %v1143_v53, %v1145_v52  ;;  %v1147_v57 = vsel %vm4191_vm5, %v1145_v52, %v1143_v53  ;;  %vm4199_vm5 = vnez %v4146_v47  ;;  %v3132_v47 = vld [vmem:[%s4107_s3] sm:$0xff] }
 0x382   : > { %v1148_v59 = vsel %vm3621_vm2, %v1147_v57, -1e+30  ;;  %v1149_v61 = vsel %vm4192_vm9, %v1146_v54, -1e+30  ;;  %vm4197_vm2 = vcmp.lt.s32.totalorder %v3602_v8, 126  ;;  %vm4200_vm9 = vnez %v4148_v48  ;;  %v3292_v48 = vld [vmem:[%s4106_s2 + $0x18] sm:$0xff] }
 0x383   : > { %v1150_v21 = vmax.f32 %v1140_v63, %v1148_v59  ;;  %v1151_v7 = vmax.f32 %v1141_v0, %v1149_v61  ;;  %vm4198_vm3 = vmmov %vm4197_vm2 }
 0x384   : > { %v1155_v43 = vpop.permute.xlu0 %1154 }
 0x385   : > { %v1153_v62 = vpop.permute.xlu1 %1152 }
 0x386   : > { %v1156_v2 = vsel %vm4193_vm13, %v1153_v62, %v1155_v43  ;;  %v1157_v18 = vsel %vm4194_vm10, %v1155_v43, %v1153_v62  ;;  %vm4201_vm13 = vcmask 15360   ;;  %vm4202_vm10 = vcmp.lt.s32.totalorder %v3602_v8, 32 }
 0x387   : > { %v1158_v19 = vsel %vm4195_vm0, %v1156_v2, -1e+30  ;;  %v1159_v6 = vsel %vm4196_vm1, %v1157_v18, -1e+30  ;;  %v2646_v24 = vsel %vm4201_vm13, %v3292_v48, 0  ;;  %vm4203_vm0 = vmmov %vm4202_vm10  ;;  %vm4204_vm1 = vcmp.lt.s32.totalorder %v3602_v8, 16 }
 0x388   : > { %v1165_v9 = vpop.permute.xlu0 %1164  ;;  %v1160_v10 = vmax.f32 %v1150_v21, %v1158_v19  ;;  %v1161_v11 = vmax.f32 %v1151_v7, %v1159_v6  ;;  %v4021_v27 = vand.u32 4294901760, %v2646_v24  ;;  %v1299_v7 = vpop.f32.mrf.mxu0 }
 0x389   : > { %v1163_v22 = vpop.permute.xlu1 %1162 }
 0x38a   : > { %v1166_v14 = vsel %vm4197_vm2, %v1163_v22, %v1165_v9  ;;  %v1167_v15 = vsel %vm4198_vm3, %v1165_v9, %v1163_v22  ;;  %vm4205_vm2 = vmmov %vm4204_vm1  ;;  %v2722_v5 = vsub.f32 %v2646_v24, %v4021_v27  ;;  %vm4206_vm3 = vcmp.lt.s32.totalorder %v3602_v8, 112  ;;  %v1301_v9 = vpop.f32.mrf.mxu0  ;;  %v1381_v22 = vpop.f32.mrf.mxu1 }
 0x38b   : > { %v1168_v17 = vsel %vm4199_vm5, %v1166_v14, -1e+30  ;;  %v1169_v31 = vsel %vm4200_vm9, %v1167_v15, -1e+30 }
 0x38c   : > { %v1170_v32 = vmax.f32 %v1160_v10, %v1168_v17  ;;  %v1171_v20 = vmax.f32 %v1161_v11, %v1169_v31  ;;  %v2723_v46 = vand.u32 4294901760, %v2722_v5  ;;  %v1458_v10 = vpop.f32.mrf.mxu0  ;;  %v1383_v11 = vpop.f32.mrf.mxu1 }
 0x38e   : > { %1174 = vrot.lane.b32.xlu0 %v1171_v20, %s3452_s17  ;;  %1172 = vrot.lane.b32.xlu1 %v1170_v32, %s3452_s17  ;;  %v2724_v49 = vsub.f32 %v2722_v5, %v2723_v46  ;;  %v1460_v14 = vpop.f32.mrf.mxu0  ;;  %v1534_v15 = vpop.f32.mrf.mxu1  ;;  %s320_s17 = sand.u32 1, %s3428_s25  }
 0x38f   : > { %s3153_s23 = scalar_lea.sflag [#allocation4], %s320_s17 }
 0x390   : > { %v2725_v0 = vand.u32 4294901760, %v2724_v49  ;;  %v1612_v17 = vpop.f32.mrf.mxu0  ;;  %v1536_v31 = vpop.f32.mrf.mxu1 }
 0x392   : > { %1184 = vrot.lane.b32.xlu0 %v1171_v20, %s3453_s18  ;;  %1182 = vrot.lane.b32.xlu1 %v1170_v32, %s3453_s18  ;;  %s3287_s18 = sshll.u32 %s320_s17, 4 }
 0x396   : > { %1194 = vrot.lane.b32.xlu0 %v1171_v20, %s3454_s19  ;;  %1192 = vrot.lane.b32.xlu1 %v1170_v32, %s3454_s19  ;;  %s3299_s19 = sshll.u32 %s3436_s27, 8  ;;  %s3372_s27 = sshll.u32 %s3456_s8, 4  ;;  %s3373_s27 = int_to_ptr.vmem [resolvable:$false] %s3372_s27 }
 0x397   : > { %s3165_s22 = scalar_lea.hbm %s4111_s7, %s3299_s19  ;;  %s3374_s10 = scalar_lea.vmem %s3373_s27, 512 }
 0x39a   : > { %1204 = vrot.lane.b32.xlu0 %v1171_v20, %s3455_s20  ;;  %1202 = vrot.lane.b32.xlu1 %v1170_v32, %s3455_s20  ;;  %s322_s20 = scalar_lea.vmem [#allocation3], %s3287_s18 }
 0x39b   : > { %s3167_s15 = sshll.u32 %s322_s20, 4  ;;  %s3168_s15 = int_to_ptr.vmem [resolvable:$true] %s3167_s15 }
 0x39c   : > { %s3368_s30 = scalar_lea.vmem %s3168_s15, 256  ;;  %p3375_p1 = scmp.lt.s32.totalorder %s3168_s15, %s3373_s27 }
 0x39d   : > { %p3369_p12 = scmp.ne.s32.totalorder %s3168_s15, %s3368_s30  ;;  %p3376_p2 = scmp.lt.s32.totalorder %s3374_s10, %s3368_s30 }
 0x39e   : > { %3135 = vperm.xlu1 %3366, %v3132_v47  }
 0x39f   : > { %p3370_p13 = pnand %p3369_p12, %p3537_p4  ;;  %p3377_p3 = por %p3376_p2, %p3375_p1 }
 0x3a1   : > { %p3371_p0 = pneg %p3370_p13 }
 0x3a3   : > { %p3378_p5 = pnand %p3377_p3, %p3371_p0 }
 0x400   : > { %v1175_v25 = vpop.permute.xlu0 %1174  ;;  %v1173_v26 = vpop.permute.xlu1 %1172 }
 0x401   : > { %v1176_v28 = vsel %vm4202_vm10, %v1173_v26, %v1175_v25  ;;  %v1177_v30 = vsel %vm4203_vm0, %v1175_v25, %v1173_v26 }
 0x402   : > { %v1178_v37 = vsel %vm3717_vm4, %v1177_v30, -1e+30  ;;  %v1179_v58 = vsel %vm3723_vm7, %v1176_v28, -1e+30  ;;  %vm4207_vm4 = vmmov %vm4206_vm3  ;;  %vm4208_vm7 = vcmp.lt.s32.totalorder %v3602_v8, 96 }
 0x403   : > { %v1180_v44 = vmax.f32 %v1170_v32, %v1178_v37  ;;  %v1181_v45 = vmax.f32 %v1171_v20, %v1179_v58  ;;  %v1614_v32 = vpop.f32.mrf.mxu0  ;;  %v1686_v20 = vpop.f32.mrf.mxu1 }
 0x404   : > { %v1185_v33 = vpop.permute.xlu0 %1184  ;;  %v1183_v36 = vpop.permute.xlu1 %1182 }
 0x405   : > { %v1186_v12 = vsel %vm4204_vm1, %v1183_v36, %v1185_v33  ;;  %v1187_v13 = vsel %vm4205_vm2, %v1185_v33, %v1183_v36  ;;  %v1773_v47 = vpop.f32.mrf.mxu0  ;;  %v1688_v48 = vpop.f32.mrf.mxu1  ;;  %v1382_v33 = vadd.f32 %v1381_v22, %v1299_v7 }
 0x406   : > { %v1188_v56 = vsel %vm3737_vm6, %v1187_v13, -1e+30  ;;  %v1189_v38 = vsel %vm3741_vm8, %v1186_v12, -1e+30  ;;  %vm4209_vm6 = vmmov %vm4208_vm7  ;;  %vm4210_vm8 = vcmask 1041408   ;;  %v1384_v13 = vadd.f32 %v1383_v11, %v1301_v9 }
 0x407   : > { %v1190_v50 = vmax.f32 %v1180_v44, %v1188_v56  ;;  %v1191_v35 = vmax.f32 %v1181_v45, %v1189_v38  ;;  %v1775_v24 = vpop.f32.mrf.mxu0  ;;  %v1855_v25 = vpop.f32.mrf.mxu1  ;;  %v1459_v37 = vadd.f32 %v1458_v10, %v1382_v33 }
 0x408   : > { %v1195_v39 = vpop.permute.xlu0 %1194  ;;  %v1193_v42 = vpop.permute.xlu1 %1192  ;;  %v1461_v56 = vadd.f32 %v1460_v14, %v1384_v13 }
 0x409   : > { %v1196_v3 = vsel %vm4206_vm3, %v1193_v42, %v1195_v39  ;;  %v1197_v16 = vsel %vm4207_vm4, %v1195_v39, %v1193_v42  ;;  %v1932_v26 = vpop.f32.mrf.mxu0  ;;  %v1857_v28 = vpop.f32.mrf.mxu1  ;;  %v1535_v38 = vadd.f32 %v1534_v15, %v1459_v37 }
 0x40a   : > { %v1198_v23 = vsel %vm3755_vm11, %v1196_v3, -1e+30  ;;  %v1199_v34 = vsel %vm3759_vm12, %v1197_v16, -1e+30  ;;  %vm4211_vm11 = vmmov %vm4210_vm8  ;;  %v1537_v44 = vadd.f32 %v1536_v31, %v1461_v56 }
 0x40b   : > { %v1200_v52 = vmax.f32 %v1190_v50, %v1198_v23  ;;  %v1201_v53 = vmax.f32 %v1191_v35, %v1199_v34  ;;  %v2008_v30 = vpop.f32.mrf.mxu1  ;;  %v1613_v45 = vadd.f32 %v1612_v17, %v1535_v38 }
 0x40c   : > { %v1205_v51 = vpop.permute.xlu0 %1204  ;;  %v1203_v4 = vpop.permute.xlu1 %1202  ;;  %v1615_v23 = vadd.f32 %v1614_v32, %v1537_v44 }
 0x40d   : > { %v1206_v54 = vsel %vm4208_vm7, %v1203_v4, %v1205_v51  ;;  %v1207_v57 = vsel %vm4209_vm6, %v1205_v51, %v1203_v4  ;;  %v2010_v36 = vpop.f32.mrf.mxu1  ;;  %v1687_v34 = vadd.f32 %v1686_v20, %v1613_v45 }
 0x40e   : > { %v1208_v40 = vsel %vm3785_vm15, %v1206_v54, -1e+30  ;;  %v1209_v41 = vsel %vm3789_vm14, %v1207_v57, -1e+30  ;;  %v1689_v35 = vadd.f32 %v1688_v48, %v1615_v23 }
 0x40f   : > { %v1210_v29 = vmax.f32 %v1200_v52, %v1208_v40  ;;  %v1211_v43 = vmax.f32 %v1201_v53, %v1209_v41  ;;  %v2160_v58 = vpop.f32.mrf.mxu1  ;;  %v1774_v51 = vadd.f32 %v1773_v47, %v1687_v34 }
 0x410   : > { %v1776_v53 = vadd.f32 %v1775_v24, %v1689_v35 }
 0x411   : > { %v2649_v59 = vsel %vm4210_vm8, %v1210_v29, 0  ;;  %v2652_v61 = vsel %vm4211_vm11, %v1211_v43, 0  ;;  %v2162_v39 = vpop.f32.mrf.mxu1  ;;  %v1856_v54 = vadd.f32 %v1855_v25, %v1774_v51 }
 0x412   : > { %v2684_v62 = vand.u32 4294901760, %v2652_v61  ;;  %v2686_v63 = vand.u32 4294901760, %v2649_v59  ;;  %v1858_v49 = vadd.f32 %v1857_v28, %v1776_v53 }
 0x413   : > { %v2331_v3 = vpop.f32.mrf.mxu1 }
 0x414   : > { %v2769_v2 = vsub.f32 %v2649_v59, %v2686_v63  ;;  %2685 = vmatprep.subr.mxu0 %v2684_v62  ;;  %v2763_v8 = vsub.f32 %v2652_v61, %v2684_v62  ;;  %v1933_v59 = vadd.f32 %v1932_v26, %v1856_v54 }
 0x415   : > { %2687 = vmatpush1.msra.mxu0 %v2686_v63 }
 0x416   : > { %2726 = vmatmul.mubr.f32.vlgmr.msra.gmra.mxu0 %v2725_v0  ;;  %2846 = vmatprep.subr.mxu0 %v2763_v8  ;;  %v2764_v55 = vand.u32 4294901760, %v2763_v8  ;;  %v2770_v18 = vand.u32 4294901760, %v2769_v2 }
 0x417   : > { %2849 = vmatpush1.msra.mxu0 %v2769_v2  ;;  %2882 = vmatprep.mubr.f32.mxu0 %v3446_v1 }
 0x418   : > { %3000 = vmatprep.subr.mxu0 %v2764_v55  ;;  %v2765_v60 = vsub.f32 %v2763_v8, %v2764_v55  ;;  %v2771_v19 = vsub.f32 %v2769_v2, %v2770_v18  ;;  %v2009_v55 = vadd.f32 %v2008_v30, %v1933_v59 }
 0x419   : > { %v3136_v56 = vpop.permute.xlu1 %3135 }
 0x41a   : > { %2885 = vmatmul.mubr.f32.vlgmr.msra.gmra.mxu0 %v2722_v5  ;;  %v2766_v6 = vand.u32 4294901760, %v2765_v60  ;;  %v2772_v21 = vand.u32 4294901760, %v2771_v19 }
 0x41b   : > { %3004 = vmatpush1.msra.mxu0 %v2770_v18  ;;  %3037 = vmatprep.mubr.f32.mxu0 %v3446_v1 }
 0x41c   : > { %2767 = vmatprep.subr.mxu1 %v2766_v6 }
 0x41d   : > { %2773 = vmatpush1.msra.mxu1 %v2772_v21 }
 0x41e   : > { %2808 = vmatmul.mubr.f32.vlgmr.msra.gmra.mxu1 %v4021_v27  ;;  %2922 = vmatprep.subr.mxu1 %v2684_v62 }
 0x41f   : > { %2924 = vmatpush1.msra.mxu1 %v2686_v63  ;;  %2957 = vmatprep.mubr.f32.mxu1 %v3446_v1 }
 0x420   : > { %3076 = vmatprep.subr.mxu1 %v2684_v62  ;;  %3039 = vmatmul.mubr.f32.vlgmr.msra.gmra.mxu0 %v4021_v27 }
 0x422   : > { %2961 = vmatmul.mubr.f32.vlgmr.msra.gmra.mxu1 %v2723_v46  ;;  %v2333_v46 = vpop.f32.mrf.mxu1 }
 0x423   : > { %3078 = vmatpush1.msra.mxu1 %v2686_v63  ;;  %3111 = vmatprep.mubr.f32.mxu1 %v3446_v1  ;;  %v1934_v1 = vpop.f32.mrf.mxu0 }
 0x424   : > { %v2484_v4 = vpop.f32.mrf.mxu1  ;;  %v1935_v0 = vadd.f32 %v1934_v1, %v1858_v49 }
 0x426   : > { %3113 = vmatmul.mubr.f32.vlgmr.msra.gmra.mxu1 %v4021_v27  ;;  %v2086_v27 = vpop.f32.mrf.mxu0  ;;  %v2486_v40 = vpop.f32.mrf.mxu1  ;;  %v2011_v19 = vadd.f32 %v2010_v36, %v1935_v0 }
 0x427   : > { %v2087_v9 = vadd.f32 %v2086_v27, %v2009_v55 }
 0x428   : > { %v2088_v12 = vpop.f32.mrf.mxu0  ;;  %v2636_v62 = vpop.f32.mrf.mxu1 }
 0x429   : > { %v2089_v14 = vadd.f32 %v2088_v12, %v2011_v19  ;;  %v2161_v47 = vadd.f32 %v2160_v58, %v2087_v9 }
 0x42a   : > { %v2249_v5 = vpop.f32.mrf.mxu0  ;;  %v2638_v60 = vpop.f32.mrf.mxu1 }
 0x42b   : > { %v2332_v57 = vadd.f32 %v2331_v3, %v2249_v5  ;;  %v2163_v28 = vadd.f32 %v2162_v39, %v2089_v14 }
 0x42c   : > { %v2251_v42 = vpop.f32.mrf.mxu0 }
 0x42d   : > { %v2334_v29 = vadd.f32 %v2333_v46, %v2251_v42 }
 0x42e   : > { %v2408_v16 = vpop.f32.mrf.mxu0 }
 0x42f   : > { %v2409_v61 = vadd.f32 %v2408_v16, %v2332_v57 }
 0x430   : > { %v2410_v50 = vpop.f32.mrf.mxu0 }
 0x431   : > { %v2411_v2 = vadd.f32 %v2410_v50, %v2334_v29  ;;  %v2485_v18 = vadd.f32 %v2484_v4, %v2409_v61 }
 0x432   : > { %v2562_v52 = vpop.f32.mrf.mxu0 }
 0x433   : > { %v2487_v6 = vadd.f32 %v2486_v40, %v2411_v2  ;;  %v2563_v22 = vadd.f32 %v2562_v52, %v2485_v18 }
 0x434   : > { %v2564_v41 = vpop.f32.mrf.mxu0 }
 0x435   : > { %v2565_v15 = vadd.f32 %v2564_v41, %v2487_v6  ;;  %v2637_v48 = vadd.f32 %v2636_v62, %v2563_v22 }
 0x437   : > { %v2639_v1 = vadd.f32 %v2638_v60, %v2565_v15  ;;  %v2641_v13 = vadd.f32 %v2637_v48, %v2161_v47 }
 0x439   : > { %v2642_v38 = vadd.f32 %v2639_v1, %v2163_v28 }
 0x4d6   : > { %v2727_v43 = vpop.f32.mrf.mxu0 }
 0x4d8   : > { %v2729_v63 = vpop.f32.mrf.mxu0 }
 0x4da   : > { %v2886_v8 = vpop.f32.mrf.mxu0 }
 0x4dc   : > { %v2888_v7 = vpop.f32.mrf.mxu0 }
 0x4de   : > { %v2809_v21 = vpop.f32.mrf.mxu1 }
 0x4df   : > { %v2810_v10 = vadd.f32 %v2809_v21, %v2727_v43 }
 0x4e0   : > { %v2811_v11 = vpop.f32.mrf.mxu1  ;;  %v3040_v20 = vpop.f32.mrf.mxu0 }
 0x4e1   : > { %v2812_v17 = vadd.f32 %v2811_v11, %v2729_v63  ;;  %v2887_v31 = vadd.f32 %v2886_v8, %v2810_v10 }
 0x4e2   : > { %v2962_v32 = vpop.f32.mrf.mxu1  ;;  %v3042_v27 = vpop.f32.mrf.mxu0 }
 0x4e3   : > { %v2889_v24 = vadd.f32 %v2888_v7, %v2812_v17  ;;  %v2963_v25 = vadd.f32 %v2962_v32, %v2887_v31 }
 0x4e4   : > { %v2964_v26 = vpop.f32.mrf.mxu1 }
 0x4e5   : > { %v2965_v30 = vadd.f32 %v2964_v26, %v2889_v24  ;;  %v3041_v33 = vadd.f32 %v3040_v20, %v2963_v25 }
 0x4e6   : > { %v3114_v36 = vpop.f32.mrf.mxu1 }
 0x4e7   : > { %v3043_v37 = vadd.f32 %v3042_v27, %v2965_v30  ;;  %v3115_v12 = vadd.f32 %v3114_v36, %v3041_v33 }
 0x4e8   : > { %v3116_v5 = vpop.f32.mrf.mxu1 }
 0x4e9   : > { %v3117_v42 = vadd.f32 %v3116_v5, %v3043_v37  ;;  %v3119_v58 = vadd.f32 %v3115_v12, %v2641_v13 }
 0x4eb   : > { %v3120_v44 = vadd.f32 %v3117_v42, %v2642_v38  ;;  %v3138_v45 = vadd.f32 %v3136_v56, %v3119_v58 }
 0x4ed   : > { %v3139_v3 = vadd.f32 %v3136_v56, %v3120_v44  ;;  %v3140_v16 = vadd.f32 3.0, %v3138_v45 }
 0x4ef   : > { %v3141_v39 = vadd.f32 3.0, %v3139_v3  ;;  %v3142_v23 = vmax.f32 %v3140_v16, 0.0 }
 0x4f1   : > { %v3143_v34 = vmax.f32 %v3141_v39, 0.0  ;;  %v3144_v46 = vmin.f32 %v3142_v23, 6.0 }
 0x4f3   : > { %v3145_v50 = vmin.f32 %v3143_v34, 6.0  ;;  %v3146_v35 = vmul.f32 %v3144_v46, %v3138_v45 }
 0x4f5   : > { %v3147_v51 = vmul.f32 %v3145_v50, %v3139_v3  ;;  %v3148_v4 = vmul.f32 0.16666667, %v3146_v35 }
 0x4f7   : > { %v3149_v52 = vmul.f32 0.16666667, %v3147_v51  ;;  %3150 = vst [vmem:[%s322_s20] sm:$0xff] %v3148_v4 }
 0x4f9   : > { %3151 = vst [vmem:[%s322_s20 + $0x8] sm:$0xff] %v3149_v52 }
 0x4fa   : > { %3381 = shalt.err (!%p3378_p5)
}
 0x4fb   : > { %s3382_s12 = scalar_lea.hbm %s3165_s22, 256  ;;  %s3386_s19 = scalar_lea.hbm %s4111_s7, 512 }
 0x4fc   : > { %p3383_p6 = scmp.ne.s32.totalorder %s3165_s22, %s3382_s12  ;;  %p3387_p10 = scmp.lt.s32.totalorder %s3165_s22, %s4111_s7 }
 0x4fd   : > { %p3388_p11 = scmp.lt.s32.totalorder %s3386_s19, %s3382_s12 }
 0x4fe   : > { %p3384_p7 = pnand %p3383_p6, %p3537_p4 }
 0x4ff   : > { %p3389_p12 = por %p3388_p11, %p3387_p10 }
 0x500   : > { %p3385_p9 = pneg %p3384_p7 }
 0x502   : > { %p3390_p13 = pnand %p3389_p12, %p3385_p9 }
 0x504   : > { %3393 = shalt.err (!%p3390_p13)
}
 0x505   : > { %3300 = dma.vmem_to_hbm [thread:$0]  (%p3537_p4), %s3168_s15, 256, %s3165_s22, %s3153_s23  }
 0x506 PF: > { %p3306_p0 = scmp.ge.s32.totalorder %s3444_s29, 2  ;;  %s3179_s21 = sand.u32 1, %s3424_s24  }
 0x507   : > { %s3180_s30 = scalar_lea.sflag [#allocation4], %s3179_s21 }
 0x508   : > { %p3303_p1 = pnand %p3306_p0, %p3544_p8 }
 0x50a   : > { %p3304_p2 = pneg %p3303_p1 }
 0x50c   : > { %3419 = dma.done.wait (%p3304_p2), %s3180_s30, 256  }
 0x50d   : > { %3421 = vsyncadd (%p3304_p2), %s3180_s30, 4294967040  ;;  %s20_s29 = sadd.s32 1, %s3444_s29   ;;  %s4212_s24 = smov %s3428_s25 }
 0x50e   : > { %p17_p3 = scmp.ge.s32.totalorder %s20_s29, 4   ;;  %s4213_s25 = smov %s3432_s26 }
 0x50f   : > { %s4214_s26 = smov %s3550_s14  ;;  %s4215_s27 = smov %s3440_s28 }
 0x510   : > { %s4216_s28 = smov %s4218_s9  ;;  %19 = sbr.rel (!%p17_p3) target bundleno = 4 (0x4), region = 103 }
 0x515   :  { %3185 = vsyncpa [#allocation4], 1 }
 0x516   :  { %3187 = vsyncpa [#allocation4 + $0x1], 1 }

</bundles_post_ra>
